<compile_context>
chip_gen: v7x
topology: tpu7x:2x2x1
jax: 0.10.0
libtpu: 0.0.40
codegen_flags: <defaults>
</compile_context>

<pallas_src>
import math

import jax
import jax.numpy as jnp
from jax.experimental import pallas as pl
from jax.experimental.pallas import tpu as pltpu

HIDDEN = 32          # hidden_dim (small for the synthetic test; module default was 128)
NUM_HEADS = 4
FC_OUT = 2
OUT_PAD = 128        # lane-dense FC output slab width; wrapper slices [:, :FC_OUT]

_VMEM = pl.BlockSpec(memory_space=pltpu.MemorySpace.VMEM)


# ------------------------------ fused Pallas kernel ------------------------------

def _hgnn_kernel(a_sc_ref, a_cw_ref, xs_ref,
                 w_sc12_ref, w_small_ref, w_big_ref, b_all_ref,
                 o_ref):
    f32 = jnp.float32
    H = HIDDEN

    a_sc = a_sc_ref[...]                 # [Ncam, Nsens]
    a_cw = a_cw_ref[...]                 # [Nwea, Ncam]
    xs = xs_ref[...]                     # [Nsens, Fs]
    n_cam = a_sc.shape[0]
    n_wea = a_cw.shape[0]
    seq_len = n_cam + n_wea

    w_sc12 = w_sc12_ref[...]             # [Fs, 2H]      : wsc1 | wsc2
    w_small = w_small_ref[...]           # [H, 5H]       : wqkv(3H) | wcw2(H) | wo(H)
    w_big = w_big_ref[...]               # [H, 8H+OUT_PAD]: wih(4H) | whh(4H) | wfc_pad
    b_all = b_all_ref[...]               # [6, 128]      : bsc12|bcw2|bqkv|bo|blstm|bfc_pad

    # ---- GCN (dead branches eliminated; shared A@X hoisted; wsc1|wsc2 packed) ----
    ax = jnp.dot(a_sc, xs, preferred_element_type=f32)                         # [Ncam, Fs]
    cam12 = jnp.maximum(
        jnp.dot(ax, w_sc12, preferred_element_type=f32) + b_all[0:1, 0:2 * H], 0.0)
    cam1 = cam12[:, 0:H]                 # layer-1 camera features (feeds weather layer 2)
    cam2 = cam12[:, H:2 * H]             # layer-2 camera features (reaches output)
    w_cw2 = w_small[:, 3 * H:4 * H]
    wea2 = jnp.maximum(
        jnp.dot(a_cw, jnp.dot(cam1, w_cw2, preferred_element_type=f32),
                preferred_element_type=f32) + b_all[1:2, 0:H], 0.0)             # [Nwea, H]

    # features = cat([cam2, wea2], dim=0) -- in-register concatenate, no VMEM round trip.
    x = jnp.concatenate([cam2, wea2], axis=0)                                  # [L, H]

    # ---- multi-head self-attention: fused QKV projection, heads via lane masks ----
    w_qkv = w_small[:, 0:3 * H]
    qkv = jnp.dot(x, w_qkv, preferred_element_type=f32) + b_all[2:3, 0:3 * H]  # [L, 3H]
    q = qkv[:, 0:H]          # 1/sqrt(d_head) already folded into wq / bq at init
    k = qkv[:, H:2 * H]
    v = qkv[:, 2 * H:3 * H]
    dh = H // NUM_HEADS
    lane = jax.lax.broadcasted_iota(jnp.int32, (1, H), 1)
    ctx = jnp.zeros((seq_len, H), f32)
    for h in range(NUM_HEADS):
        head_mask = (lane >= h * dh) & (lane < (h + 1) * dh)        # [1, H] lane mask
        qh = jnp.where(head_mask, q, 0.0)                           # zero outside head lanes
        vh = jnp.where(head_mask, v, 0.0)
        # full-width matmul == Qh @ Kh^T (zeroed lanes contribute nothing)
        s = jax.lax.dot_general(qh, k, (((1,), (1,)), ((), ())),
                                preferred_element_type=f32)         # [L, L]
        s = s - jnp.max(s, axis=-1, keepdims=True)
        p = jnp.exp(s)
        p = p * pl.reciprocal(jnp.sum(p, axis=-1, keepdims=True), approx=True)
        # head output lands in its own lane range of ctx; summing heads == concat
        ctx = ctx + jnp.dot(p, vh, preferred_element_type=f32)
    w_o = w_small[:, 4 * H:5 * H]
    attn = jnp.dot(ctx, w_o, preferred_element_type=f32) + b_all[3:4, 0:H]     # [L, H]

    # ---- LSTM: input projection hoisted & vreg-resident; short recurrence fully unrolled ----
    w_ih = w_big[:, 0:4 * H]
    w_hh = w_big[:, 4 * H:8 * H]
    gx = jnp.dot(attn, w_ih, preferred_element_type=f32) + b_all[4:5, :]       # [L, 4H]
    row = jax.lax.broadcasted_iota(jnp.int32, (seq_len, 1), 0)
    h_t = jnp.zeros((1, H), f32)
    c_t = jnp.zeros((1, H), f32)
    hs = jnp.zeros((seq_len, H), f32)
    for t in range(seq_len):   # static trip count -> fully unrolled, static row indices
        g = gx[t:t + 1, :] + jnp.dot(h_t, w_hh, preferred_element_type=f32)    # [1, 4H]
        sg = jax.nn.sigmoid(g)           # one EUP pass over the full gate vector
        tg = jnp.tanh(g)                 # one EUP pass over the full gate vector
        i_g = sg[:, 0:H]
        f_g = sg[:, H:2 * H]
        g_g = tg[:, 2 * H:3 * H]
        o_g = sg[:, 3 * H:4 * H]
        c_t = f_g * c_t + i_g * g_g
        h_t = o_g * jnp.tanh(c_t)
        hs = jnp.where(row == t, h_t, hs)      # vreg-resident history, no VMEM stores

    # ---- final FC over all hidden states: lane-dense (128-wide) output slab ----
    w_fc = w_big[:, 8 * H:8 * H + OUT_PAD]
    o_ref[...] = jnp.dot(hs, w_fc, preferred_element_type=f32) + b_all[5:6, 0:OUT_PAD]


def hgnn_pallas_call(params, x_sensor, a_sc, a_cw):
    n_cam, n_wea = a_sc.shape[0], a_cw.shape[0]
    seq_len = n_cam + n_wea
    args = [a_sc, a_cw, x_sensor,
            params["w_sc12"], params["w_small"], params["w_big"], params["b_all"]]
    out = pl.pallas_call(
        _hgnn_kernel,
        out_shape=jax.ShapeDtypeStruct((seq_len, OUT_PAD), jnp.float32),
        in_specs=[_VMEM] * len(args),
        out_specs=_VMEM,
    )(*args)
    return out[:, :FC_OUT]


# --------------------------------- glue (JAX) ---------------------------------

def build_norm_adj(edge_index, n_src, n_dst):
    """Dense GCN-normalized bipartite adjacency, A[dst, src] = 1/sqrt(deg_dst*deg_src)."""
    src, dst = edge_index[0], edge_index[1]
    deg_src = jnp.zeros((n_src,), jnp.float32).at[src].add(1.0)
    deg_dst = jnp.zeros((n_dst,), jnp.float32).at[dst].add(1.0)
    dsi = jnp.where(deg_src > 0, jax.lax.rsqrt(jnp.maximum(deg_src, 1.0)), 0.0)
    ddi = jnp.where(deg_dst > 0, jax.lax.rsqrt(jnp.maximum(deg_dst, 1.0)), 0.0)
    norm = dsi[src] * ddi[dst]
    return jnp.zeros((n_dst, n_src), jnp.float32).at[dst, src].add(norm)


def _init_linear(key, in_dim, out_dim):
    kw, kb = jax.random.split(key)
    w = jax.random.normal(kw, (in_dim, out_dim), jnp.float32) * 0.1   # stored as [in, out]
    b = jax.random.normal(kb, (1, out_dim), jnp.float32) * 0.1
    return w, b


def _pad_row(b, width=128):
    return jnp.pad(b, ((0, 0), (0, width - b.shape[1])))


def init_params(key, f_sensor, f_camera):
    """Only the parameters that can reach the output are created, then packed into slabs."""
    del f_camera  # x_camera / wcw0 only feed wea0, which HeteroConv layer 2 overwrites
    keys = jax.random.split(key, 13)
    H = HIDDEN
    # Same key indices as the original per-layer init, so surviving weights are identical.
    w_sc1, b_sc1 = _init_linear(keys[2], f_sensor, H)      # layer-1 sensor -> camera
    w_sc2, b_sc2 = _init_linear(keys[4], f_sensor, H)      # layer-2 sensor -> camera
    w_cw2, b_cw2 = _init_linear(keys[5], H, H)             # layer-2 camera -> weather
    wq, bq = _init_linear(keys[6], H, H)
    wk, bk = _init_linear(keys[7], H, H)
    wv, bv = _init_linear(keys[8], H, H)
    wo, bo = _init_linear(keys[9], H, H)
    wih, bih = _init_linear(keys[10], H, 4 * H)
    whh, bhh = _init_linear(keys[11], H, 4 * H)
    wfc, bfc = _init_linear(keys[12], H, FC_OUT)

    scale = 1.0 / math.sqrt(H // NUM_HEADS)                # fold attention scale into wq/bq

    w_sc12 = jnp.concatenate([w_sc1, w_sc2], axis=1)                       # [Fs, 2H]
    w_qkv = jnp.concatenate([wq * scale, wk, wv], axis=1)                  # [H, 3H]
    w_small = jnp.concatenate([w_qkv, w_cw2, wo], axis=1)                  # [H, 5H]
    wfc_pad = jnp.pad(wfc, ((0, 0), (0, OUT_PAD - FC_OUT)))                # [H, 128]
    w_big = jnp.concatenate([wih, whh, wfc_pad], axis=1)                   # [H, 8H+128]
    b_all = jnp.concatenate([
        _pad_row(jnp.concatenate([b_sc1, b_sc2], axis=1)),                 # row 0: b_sc12
        _pad_row(b_cw2),                                                   # row 1: b_cw2
        _pad_row(jnp.concatenate([bq * scale, bk, bv], axis=1)),           # row 2: b_qkv
        _pad_row(bo),                                                      # row 3: b_o
        _pad_row(bih + bhh),                                               # row 4: b_lstm
        _pad_row(bfc, OUT_PAD),                                            # row 5: b_fc_pad
    ], axis=0)                                                             # [6, 128]
    return dict(w_sc12=w_sc12, w_small=w_small, w_big=w_big, b_all=b_all)


@jax.jit
def hgnn_forward(params, x_sensor, a_sc, a_cw):
    return hgnn_pallas_call(params, x_sensor, a_sc, a_cw)


if __name__ == "__main__":
    key = jax.random.PRNGKey(0)
    k_xs, k_xc, k_xw, k_e1, k_e2, k_e3, k_e4, k_p = jax.random.split(key, 8)

    N_SENSOR, N_CAMERA, N_WEATHER = 8, 6, 4
    F_SENSOR, F_CAMERA, F_WEATHER = 12, 10, 6

    x_sensor = jax.random.normal(k_xs, (N_SENSOR, F_SENSOR), jnp.float32)
    # x_camera / x_weather exist in the module's x_dict but (under HeteroConv dst-type
    # semantics) can never influence the output: weather is never a message source and
    # the layer-0 weather output built from x_camera is overwritten by layers 1/2.
    x_camera = jax.random.normal(k_xc, (N_CAMERA, F_CAMERA), jnp.float32)
    x_weather = jax.random.normal(k_xw, (N_WEATHER, F_WEATHER), jnp.float32)

    edge_sc = jnp.stack([jax.random.randint(k_e1, (16,), 0, N_SENSOR),
                         jax.random.randint(k_e2, (16,), 0, N_CAMERA)])       # [2, 16]
    edge_cw = jnp.stack([jax.random.randint(k_e3, (10,), 0, N_CAMERA),
                         jax.random.randint(k_e4, (10,), 0, N_WEATHER)])      # [2, 10]

    a_sc = build_norm_adj(edge_sc, N_SENSOR, N_CAMERA)   # [N_camera, N_sensor]
    a_cw = build_norm_adj(edge_cw, N_CAMERA, N_WEATHER)  # [N_weather, N_camera]

    params = init_params(k_p, F_SENSOR, F_CAMERA)

    out = hgnn_forward(params, x_sensor, a_sc, a_cw)
    out = jax.block_until_ready(out)
    assert out.shape == (N_CAMERA + N_WEATHER, FC_OUT)
    assert jnp.all(jnp.isfinite(out))
    print("KERNEL_OK")
</pallas_src>

<mosaic_0001>
module attributes {stable_mosaic.version = 11 : i64} {
  func.func @_hgnn_kernel(%arg0: memref<6x8xf32, #tpu.memory_space<vmem>>, %arg1: memref<4x6xf32, #tpu.memory_space<vmem>>, %arg2: memref<8x12xf32, #tpu.memory_space<vmem>>, %arg3: memref<12x64xf32, #tpu.memory_space<vmem>>, %arg4: memref<32x160xf32, #tpu.memory_space<vmem>>, %arg5: memref<32x384xf32, #tpu.memory_space<vmem>>, %arg6: memref<6x128xf32, #tpu.memory_space<vmem>>, %arg7: memref<10x128xf32, #tpu.memory_space<vmem>>) attributes {dimension_semantics = [], scalar_prefetch = 0 : i64, scratch_operands = 0 : i64, tpu.core_type = #tpu.core_type<tc>} {
    %c0 = arith.constant 0 : index
    %c0_0 = arith.constant 0 : index
    %0 = vector.load %arg0[%c0, %c0_0] : memref<6x8xf32, #tpu.memory_space<vmem>>, vector<6x8xf32>
    %c0_1 = arith.constant 0 : index
    %c0_2 = arith.constant 0 : index
    %1 = vector.load %arg1[%c0_1, %c0_2] : memref<4x6xf32, #tpu.memory_space<vmem>>, vector<4x6xf32>
    %c0_3 = arith.constant 0 : index
    %c0_4 = arith.constant 0 : index
    %2 = vector.load %arg2[%c0_3, %c0_4] : memref<8x12xf32, #tpu.memory_space<vmem>>, vector<8x12xf32>
    %c0_5 = arith.constant 0 : index
    %c0_6 = arith.constant 0 : index
    %3 = vector.load %arg3[%c0_5, %c0_6] : memref<12x64xf32, #tpu.memory_space<vmem>>, vector<12x64xf32>
    %c0_7 = arith.constant 0 : index
    %c0_8 = arith.constant 0 : index
    %4 = vector.load %arg4[%c0_7, %c0_8] : memref<32x160xf32, #tpu.memory_space<vmem>>, vector<32x160xf32>
    %c0_9 = arith.constant 0 : index
    %c0_10 = arith.constant 0 : index
    %5 = vector.load %arg5[%c0_9, %c0_10] : memref<32x384xf32, #tpu.memory_space<vmem>>, vector<32x384xf32>
    %c0_11 = arith.constant 0 : index
    %c0_12 = arith.constant 0 : index
    %6 = vector.load %arg6[%c0_11, %c0_12] : memref<6x128xf32, #tpu.memory_space<vmem>>, vector<6x128xf32>
    %cst = arith.constant dense<0.000000e+00> : vector<6x12xf32>
    %7 = tpu.matmul %0, %2, %cst {dimension_numbers = #tpu.dot_dimension_numbers<[1], [0], [0], [1], [0, 0, 1, 1], [], []>} : vector<6x8xf32>, vector<8x12xf32>, vector<6x12xf32> -> vector<6x12xf32>
    %cst_13 = arith.constant dense<0.000000e+00> : vector<6x64xf32>
    %8 = tpu.matmul %7, %3, %cst_13 {dimension_numbers = #tpu.dot_dimension_numbers<[1], [0], [0], [1], [0, 0, 1, 1], [], []>} : vector<6x12xf32>, vector<12x64xf32>, vector<6x64xf32> -> vector<6x64xf32>
    %9 = vector.extract_strided_slice %6 {offsets = [0, 0], sizes = [1, 64], strides = [1, 1]} : vector<6x128xf32> to vector<1x64xf32>
    %10 = vector.broadcast %9 : vector<1x64xf32> to vector<6x64xf32>
    %11 = arith.addf %8, %10 : vector<6x64xf32>
    %cst_14 = arith.constant 0.000000e+00 : f32
    %12 = vector.broadcast %cst_14 : f32 to vector<6x64xf32>
    %13 = arith.maximumf %11, %12 : vector<6x64xf32>
    %14 = vector.extract_strided_slice %13 {offsets = [0, 0], sizes = [6, 32], strides = [1, 1]} : vector<6x64xf32> to vector<6x32xf32>
    %15 = vector.extract_strided_slice %13 {offsets = [0, 32], sizes = [6, 32], strides = [1, 1]} : vector<6x64xf32> to vector<6x32xf32>
    %16 = vector.extract_strided_slice %4 {offsets = [0, 96], sizes = [32, 32], strides = [1, 1]} : vector<32x160xf32> to vector<32x32xf32>
    %cst_15 = arith.constant dense<0.000000e+00> : vector<6x32xf32>
    %17 = tpu.matmul %14, %16, %cst_15 {dimension_numbers = #tpu.dot_dimension_numbers<[1], [0], [0], [1], [0, 0, 1, 1], [], []>} : vector<6x32xf32>, vector<32x32xf32>, vector<6x32xf32> -> vector<6x32xf32>
    %cst_16 = arith.constant dense<0.000000e+00> : vector<4x32xf32>
    %18 = tpu.matmul %1, %17, %cst_16 {dimension_numbers = #tpu.dot_dimension_numbers<[1], [0], [0], [1], [0, 0, 1, 1], [], []>} : vector<4x6xf32>, vector<6x32xf32>, vector<4x32xf32> -> vector<4x32xf32>
    %19 = vector.extract_strided_slice %6 {offsets = [1, 0], sizes = [1, 32], strides = [1, 1]} : vector<6x128xf32> to vector<1x32xf32>
    %20 = vector.broadcast %19 : vector<1x32xf32> to vector<4x32xf32>
    %21 = arith.addf %18, %20 : vector<4x32xf32>
    %cst_17 = arith.constant 0.000000e+00 : f32
    %22 = vector.broadcast %cst_17 : f32 to vector<4x32xf32>
    %23 = arith.maximumf %21, %22 : vector<4x32xf32>
    %24 = tpu.concatenate %15, %23 in 0 : vector<6x32xf32>, vector<4x32xf32> -> vector<10x32xf32>
    %25 = vector.extract_strided_slice %4 {offsets = [0, 0], sizes = [32, 96], strides = [1, 1]} : vector<32x160xf32> to vector<32x96xf32>
    %cst_18 = arith.constant dense<0.000000e+00> : vector<10x96xf32>
    %26 = tpu.matmul %24, %25, %cst_18 {dimension_numbers = #tpu.dot_dimension_numbers<[1], [0], [0], [1], [0, 0, 1, 1], [], []>} : vector<10x32xf32>, vector<32x96xf32>, vector<10x96xf32> -> vector<10x96xf32>
    %27 = vector.extract_strided_slice %6 {offsets = [2, 0], sizes = [1, 96], strides = [1, 1]} : vector<6x128xf32> to vector<1x96xf32>
    %28 = vector.broadcast %27 : vector<1x96xf32> to vector<10x96xf32>
    %29 = arith.addf %26, %28 : vector<10x96xf32>
    %30 = vector.extract_strided_slice %29 {offsets = [0, 0], sizes = [10, 32], strides = [1, 1]} : vector<10x96xf32> to vector<10x32xf32>
    %31 = vector.extract_strided_slice %29 {offsets = [0, 32], sizes = [10, 32], strides = [1, 1]} : vector<10x96xf32> to vector<10x32xf32>
    %32 = vector.extract_strided_slice %29 {offsets = [0, 64], sizes = [10, 32], strides = [1, 1]} : vector<10x96xf32> to vector<10x32xf32>
    %33 = tpu.iota {dimensions = array<i32: 1>} : vector<1x32xi32>
    %cst_19 = arith.constant 0.000000e+00 : f32
    %34 = vector.broadcast %cst_19 : f32 to vector<10x32xf32>
    %c0_i32 = arith.constant 0 : i32
    %35 = vector.broadcast %c0_i32 : i32 to vector<1x32xi32>
    %36 = arith.cmpi sge, %33, %35 : vector<1x32xi32>
    %c8_i32 = arith.constant 8 : i32
    %37 = vector.broadcast %c8_i32 : i32 to vector<1x32xi32>
    %38 = arith.cmpi slt, %33, %37 : vector<1x32xi32>
    %39 = arith.andi %36, %38 : vector<1x32xi1>
    %cst_20 = arith.constant 0.000000e+00 : f32
    %40 = vector.shape_cast %39 : vector<1x32xi1> to vector<1x32xi1>
    %41 = vector.broadcast %40 : vector<1x32xi1> to vector<10x32xi1>
    %42 = vector.broadcast %cst_20 : f32 to vector<10x32xf32>
    %43 = arith.select %41, %30, %42 : vector<10x32xi1>, vector<10x32xf32>
    %cst_21 = arith.constant 0.000000e+00 : f32
    %44 = vector.shape_cast %39 : vector<1x32xi1> to vector<1x32xi1>
    %45 = vector.broadcast %44 : vector<1x32xi1> to vector<10x32xi1>
    %46 = vector.broadcast %cst_21 : f32 to vector<10x32xf32>
    %47 = arith.select %45, %32, %46 : vector<10x32xi1>, vector<10x32xf32>
    %cst_22 = arith.constant dense<0.000000e+00> : vector<10x10xf32>
    %48 = tpu.matmul %43, %31, %cst_22 {dimension_numbers = #tpu.dot_dimension_numbers<[1], [1], [0], [0], [0, 0, 1, 0], [], []>} : vector<10x32xf32>, vector<10x32xf32>, vector<10x10xf32> -> vector<10x10xf32>
    %cst_23 = arith.constant dense<0xFF800000> : vector<10xf32>
    %49 = vector.multi_reduction <maximumf>, %48, %cst_23 [1] : vector<10x10xf32> to vector<10xf32>
    %50 = vector.shape_cast %49 : vector<10xf32> to vector<10x1xf32>
    %51 = vector.broadcast %50 : vector<10x1xf32> to vector<10x10xf32>
    %52 = arith.subf %48, %51 : vector<10x10xf32>
    %53 = math.exp %52 : vector<10x10xf32>
    %cst_24 = arith.constant dense<0.000000e+00> : vector<10xf32>
    %54 = vector.multi_reduction <add>, %53, %cst_24 [1] : vector<10x10xf32> to vector<10xf32>
    %55 = vector.shape_cast %54 : vector<10xf32> to vector<10x1xf32>
    %56 = tpu.reciprocal %55 {approx = true} : vector<10x1xf32> -> vector<10x1xf32>
    %57 = vector.broadcast %56 : vector<10x1xf32> to vector<10x10xf32>
    %58 = arith.mulf %53, %57 : vector<10x10xf32>
    %cst_25 = arith.constant dense<0.000000e+00> : vector<10x32xf32>
    %59 = tpu.matmul %58, %47, %cst_25 {dimension_numbers = #tpu.dot_dimension_numbers<[1], [0], [0], [1], [0, 0, 1, 1], [], []>} : vector<10x10xf32>, vector<10x32xf32>, vector<10x32xf32> -> vector<10x32xf32>
    %60 = arith.addf %34, %59 : vector<10x32xf32>
    %c8_i32_26 = arith.constant 8 : i32
    %61 = vector.broadcast %c8_i32_26 : i32 to vector<1x32xi32>
    %62 = arith.cmpi sge, %33, %61 : vector<1x32xi32>
    %c16_i32 = arith.constant 16 : i32
    %63 = vector.broadcast %c16_i32 : i32 to vector<1x32xi32>
    %64 = arith.cmpi slt, %33, %63 : vector<1x32xi32>
    %65 = arith.andi %62, %64 : vector<1x32xi1>
    %cst_27 = arith.constant 0.000000e+00 : f32
    %66 = vector.shape_cast %65 : vector<1x32xi1> to vector<1x32xi1>
    %67 = vector.broadcast %66 : vector<1x32xi1> to vector<10x32xi1>
    %68 = vector.broadcast %cst_27 : f32 to vector<10x32xf32>
    %69 = arith.select %67, %30, %68 : vector<10x32xi1>, vector<10x32xf32>
    %cst_28 = arith.constant 0.000000e+00 : f32
    %70 = vector.shape_cast %65 : vector<1x32xi1> to vector<1x32xi1>
    %71 = vector.broadcast %70 : vector<1x32xi1> to vector<10x32xi1>
    %72 = vector.broadcast %cst_28 : f32 to vector<10x32xf32>
    %73 = arith.select %71, %32, %72 : vector<10x32xi1>, vector<10x32xf32>
    %cst_29 = arith.constant dense<0.000000e+00> : vector<10x10xf32>
    %74 = tpu.matmul %69, %31, %cst_29 {dimension_numbers = #tpu.dot_dimension_numbers<[1], [1], [0], [0], [0, 0, 1, 0], [], []>} : vector<10x32xf32>, vector<10x32xf32>, vector<10x10xf32> -> vector<10x10xf32>
    %cst_30 = arith.constant dense<0xFF800000> : vector<10xf32>
    %75 = vector.multi_reduction <maximumf>, %74, %cst_30 [1] : vector<10x10xf32> to vector<10xf32>
    %76 = vector.shape_cast %75 : vector<10xf32> to vector<10x1xf32>
    %77 = vector.broadcast %76 : vector<10x1xf32> to vector<10x10xf32>
    %78 = arith.subf %74, %77 : vector<10x10xf32>
    %79 = math.exp %78 : vector<10x10xf32>
    %cst_31 = arith.constant dense<0.000000e+00> : vector<10xf32>
    %80 = vector.multi_reduction <add>, %79, %cst_31 [1] : vector<10x10xf32> to vector<10xf32>
    %81 = vector.shape_cast %80 : vector<10xf32> to vector<10x1xf32>
    %82 = tpu.reciprocal %81 {approx = true} : vector<10x1xf32> -> vector<10x1xf32>
    %83 = vector.broadcast %82 : vector<10x1xf32> to vector<10x10xf32>
    %84 = arith.mulf %79, %83 : vector<10x10xf32>
    %cst_32 = arith.constant dense<0.000000e+00> : vector<10x32xf32>
    %85 = tpu.matmul %84, %73, %cst_32 {dimension_numbers = #tpu.dot_dimension_numbers<[1], [0], [0], [1], [0, 0, 1, 1], [], []>} : vector<10x10xf32>, vector<10x32xf32>, vector<10x32xf32> -> vector<10x32xf32>
    %86 = arith.addf %60, %85 : vector<10x32xf32>
    %c16_i32_33 = arith.constant 16 : i32
    %87 = vector.broadcast %c16_i32_33 : i32 to vector<1x32xi32>
    %88 = arith.cmpi sge, %33, %87 : vector<1x32xi32>
    %c24_i32 = arith.constant 24 : i32
    %89 = vector.broadcast %c24_i32 : i32 to vector<1x32xi32>
    %90 = arith.cmpi slt, %33, %89 : vector<1x32xi32>
    %91 = arith.andi %88, %90 : vector<1x32xi1>
    %cst_34 = arith.constant 0.000000e+00 : f32
    %92 = vector.shape_cast %91 : vector<1x32xi1> to vector<1x32xi1>
    %93 = vector.broadcast %92 : vector<1x32xi1> to vector<10x32xi1>
    %94 = vector.broadcast %cst_34 : f32 to vector<10x32xf32>
    %95 = arith.select %93, %30, %94 : vector<10x32xi1>, vector<10x32xf32>
    %cst_35 = arith.constant 0.000000e+00 : f32
    %96 = vector.shape_cast %91 : vector<1x32xi1> to vector<1x32xi1>
    %97 = vector.broadcast %96 : vector<1x32xi1> to vector<10x32xi1>
    %98 = vector.broadcast %cst_35 : f32 to vector<10x32xf32>
    %99 = arith.select %97, %32, %98 : vector<10x32xi1>, vector<10x32xf32>
    %cst_36 = arith.constant dense<0.000000e+00> : vector<10x10xf32>
    %100 = tpu.matmul %95, %31, %cst_36 {dimension_numbers = #tpu.dot_dimension_numbers<[1], [1], [0], [0], [0, 0, 1, 0], [], []>} : vector<10x32xf32>, vector<10x32xf32>, vector<10x10xf32> -> vector<10x10xf32>
    %cst_37 = arith.constant dense<0xFF800000> : vector<10xf32>
    %101 = vector.multi_reduction <maximumf>, %100, %cst_37 [1] : vector<10x10xf32> to vector<10xf32>
    %102 = vector.shape_cast %101 : vector<10xf32> to vector<10x1xf32>
    %103 = vector.broadcast %102 : vector<10x1xf32> to vector<10x10xf32>
    %104 = arith.subf %100, %103 : vector<10x10xf32>
    %105 = math.exp %104 : vector<10x10xf32>
    %cst_38 = arith.constant dense<0.000000e+00> : vector<10xf32>
    %106 = vector.multi_reduction <add>, %105, %cst_38 [1] : vector<10x10xf32> to vector<10xf32>
    %107 = vector.shape_cast %106 : vector<10xf32> to vector<10x1xf32>
    %108 = tpu.reciprocal %107 {approx = true} : vector<10x1xf32> -> vector<10x1xf32>
    %109 = vector.broadcast %108 : vector<10x1xf32> to vector<10x10xf32>
    %110 = arith.mulf %105, %109 : vector<10x10xf32>
    %cst_39 = arith.constant dense<0.000000e+00> : vector<10x32xf32>
    %111 = tpu.matmul %110, %99, %cst_39 {dimension_numbers = #tpu.dot_dimension_numbers<[1], [0], [0], [1], [0, 0, 1, 1], [], []>} : vector<10x10xf32>, vector<10x32xf32>, vector<10x32xf32> -> vector<10x32xf32>
    %112 = arith.addf %86, %111 : vector<10x32xf32>
    %c24_i32_40 = arith.constant 24 : i32
    %113 = vector.broadcast %c24_i32_40 : i32 to vector<1x32xi32>
    %114 = arith.cmpi sge, %33, %113 : vector<1x32xi32>
    %c32_i32 = arith.constant 32 : i32
    %115 = vector.broadcast %c32_i32 : i32 to vector<1x32xi32>
    %116 = arith.cmpi slt, %33, %115 : vector<1x32xi32>
    %117 = arith.andi %114, %116 : vector<1x32xi1>
    %cst_41 = arith.constant 0.000000e+00 : f32
    %118 = vector.shape_cast %117 : vector<1x32xi1> to vector<1x32xi1>
    %119 = vector.broadcast %118 : vector<1x32xi1> to vector<10x32xi1>
    %120 = vector.broadcast %cst_41 : f32 to vector<10x32xf32>
    %121 = arith.select %119, %30, %120 : vector<10x32xi1>, vector<10x32xf32>
    %cst_42 = arith.constant 0.000000e+00 : f32
    %122 = vector.shape_cast %117 : vector<1x32xi1> to vector<1x32xi1>
    %123 = vector.broadcast %122 : vector<1x32xi1> to vector<10x32xi1>
    %124 = vector.broadcast %cst_42 : f32 to vector<10x32xf32>
    %125 = arith.select %123, %32, %124 : vector<10x32xi1>, vector<10x32xf32>
    %cst_43 = arith.constant dense<0.000000e+00> : vector<10x10xf32>
    %126 = tpu.matmul %121, %31, %cst_43 {dimension_numbers = #tpu.dot_dimension_numbers<[1], [1], [0], [0], [0, 0, 1, 0], [], []>} : vector<10x32xf32>, vector<10x32xf32>, vector<10x10xf32> -> vector<10x10xf32>
    %cst_44 = arith.constant dense<0xFF800000> : vector<10xf32>
    %127 = vector.multi_reduction <maximumf>, %126, %cst_44 [1] : vector<10x10xf32> to vector<10xf32>
    %128 = vector.shape_cast %127 : vector<10xf32> to vector<10x1xf32>
    %129 = vector.broadcast %128 : vector<10x1xf32> to vector<10x10xf32>
    %130 = arith.subf %126, %129 : vector<10x10xf32>
    %131 = math.exp %130 : vector<10x10xf32>
    %cst_45 = arith.constant dense<0.000000e+00> : vector<10xf32>
    %132 = vector.multi_reduction <add>, %131, %cst_45 [1] : vector<10x10xf32> to vector<10xf32>
    %133 = vector.shape_cast %132 : vector<10xf32> to vector<10x1xf32>
    %134 = tpu.reciprocal %133 {approx = true} : vector<10x1xf32> -> vector<10x1xf32>
    %135 = vector.broadcast %134 : vector<10x1xf32> to vector<10x10xf32>
    %136 = arith.mulf %131, %135 : vector<10x10xf32>
    %cst_46 = arith.constant dense<0.000000e+00> : vector<10x32xf32>
    %137 = tpu.matmul %136, %125, %cst_46 {dimension_numbers = #tpu.dot_dimension_numbers<[1], [0], [0], [1], [0, 0, 1, 1], [], []>} : vector<10x10xf32>, vector<10x32xf32>, vector<10x32xf32> -> vector<10x32xf32>
    %138 = arith.addf %112, %137 : vector<10x32xf32>
    %139 = vector.extract_strided_slice %4 {offsets = [0, 128], sizes = [32, 32], strides = [1, 1]} : vector<32x160xf32> to vector<32x32xf32>
    %cst_47 = arith.constant dense<0.000000e+00> : vector<10x32xf32>
    %140 = tpu.matmul %138, %139, %cst_47 {dimension_numbers = #tpu.dot_dimension_numbers<[1], [0], [0], [1], [0, 0, 1, 1], [], []>} : vector<10x32xf32>, vector<32x32xf32>, vector<10x32xf32> -> vector<10x32xf32>
    %141 = vector.extract_strided_slice %6 {offsets = [3, 0], sizes = [1, 32], strides = [1, 1]} : vector<6x128xf32> to vector<1x32xf32>
    %142 = vector.broadcast %141 : vector<1x32xf32> to vector<10x32xf32>
    %143 = arith.addf %140, %142 : vector<10x32xf32>
    %144 = vector.extract_strided_slice %5 {offsets = [0, 0], sizes = [32, 128], strides = [1, 1]} : vector<32x384xf32> to vector<32x128xf32>
    %145 = vector.extract_strided_slice %5 {offsets = [0, 128], sizes = [32, 128], strides = [1, 1]} : vector<32x384xf32> to vector<32x128xf32>
    %cst_48 = arith.constant dense<0.000000e+00> : vector<10x128xf32>
    %146 = tpu.matmul %143, %144, %cst_48 {dimension_numbers = #tpu.dot_dimension_numbers<[1], [0], [0], [1], [0, 0, 1, 1], [], []>} : vector<10x32xf32>, vector<32x128xf32>, vector<10x128xf32> -> vector<10x128xf32>
    %147 = vector.extract_strided_slice %6 {offsets = [4, 0], sizes = [1, 128], strides = [1, 1]} : vector<6x128xf32> to vector<1x128xf32>
    %148 = vector.broadcast %147 : vector<1x128xf32> to vector<10x128xf32>
    %149 = arith.addf %146, %148 : vector<10x128xf32>
    %150 = tpu.iota {dimensions = array<i32: 0>} : vector<10x1xi32>
    %cst_49 = arith.constant 0.000000e+00 : f32
    %151 = vector.broadcast %cst_49 : f32 to vector<1x32xf32>
    %cst_50 = arith.constant 0.000000e+00 : f32
    %152 = vector.broadcast %cst_50 : f32 to vector<1x32xf32>
    %cst_51 = arith.constant 0.000000e+00 : f32
    %153 = vector.broadcast %cst_51 : f32 to vector<10x32xf32>
    %154 = vector.extract_strided_slice %149 {offsets = [0, 0], sizes = [1, 128], strides = [1, 1]} : vector<10x128xf32> to vector<1x128xf32>
    %cst_52 = arith.constant dense<0.000000e+00> : vector<1x128xf32>
    %155 = tpu.matmul %151, %145, %cst_52 {dimension_numbers = #tpu.dot_dimension_numbers<[1], [0], [0], [1], [0, 0, 1, 1], [], []>} : vector<1x32xf32>, vector<32x128xf32>, vector<1x128xf32> -> vector<1x128xf32>
    %156 = arith.addf %154, %155 : vector<1x128xf32>
    %157 = arith.negf %156 : vector<1x128xf32>
    %158 = math.exp %157 : vector<1x128xf32>
    %cst_53 = arith.constant 1.000000e+00 : f32
    %159 = vector.broadcast %cst_53 : f32 to vector<1x128xf32>
    %160 = arith.addf %159, %158 : vector<1x128xf32>
    %161 = arith.divf %159, %160 : vector<1x128xf32>
    %162 = math.tanh %156 : vector<1x128xf32>
    %163 = vector.extract_strided_slice %161 {offsets = [0, 0], sizes = [1, 32], strides = [1, 1]} : vector<1x128xf32> to vector<1x32xf32>
    %164 = vector.extract_strided_slice %161 {offsets = [0, 32], sizes = [1, 32], strides = [1, 1]} : vector<1x128xf32> to vector<1x32xf32>
    %165 = vector.extract_strided_slice %162 {offsets = [0, 64], sizes = [1, 32], strides = [1, 1]} : vector<1x128xf32> to vector<1x32xf32>
    %166 = vector.extract_strided_slice %161 {offsets = [0, 96], sizes = [1, 32], strides = [1, 1]} : vector<1x128xf32> to vector<1x32xf32>
    %167 = arith.mulf %164, %152 : vector<1x32xf32>
    %168 = arith.mulf %163, %165 : vector<1x32xf32>
    %169 = arith.addf %167, %168 : vector<1x32xf32>
    %170 = math.tanh %169 : vector<1x32xf32>
    %171 = arith.mulf %166, %170 : vector<1x32xf32>
    %c0_i32_54 = arith.constant 0 : i32
    %172 = vector.broadcast %c0_i32_54 : i32 to vector<10x1xi32>
    %173 = arith.cmpi eq, %150, %172 : vector<10x1xi32>
    %174 = vector.shape_cast %173 : vector<10x1xi1> to vector<10x1xi1>
    %175 = vector.broadcast %174 : vector<10x1xi1> to vector<10x32xi1>
    %176 = vector.shape_cast %171 : vector<1x32xf32> to vector<1x32xf32>
    %177 = vector.broadcast %176 : vector<1x32xf32> to vector<10x32xf32>
    %178 = arith.select %175, %177, %153 : vector<10x32xi1>, vector<10x32xf32>
    %179 = vector.extract_strided_slice %149 {offsets = [1, 0], sizes = [1, 128], strides = [1, 1]} : vector<10x128xf32> to vector<1x128xf32>
    %cst_55 = arith.constant dense<0.000000e+00> : vector<1x128xf32>
    %180 = tpu.matmul %171, %145, %cst_55 {dimension_numbers = #tpu.dot_dimension_numbers<[1], [0], [0], [1], [0, 0, 1, 1], [], []>} : vector<1x32xf32>, vector<32x128xf32>, vector<1x128xf32> -> vector<1x128xf32>
    %181 = arith.addf %179, %180 : vector<1x128xf32>
    %182 = arith.negf %181 : vector<1x128xf32>
    %183 = math.exp %182 : vector<1x128xf32>
    %cst_56 = arith.constant 1.000000e+00 : f32
    %184 = vector.broadcast %cst_56 : f32 to vector<1x128xf32>
    %185 = arith.addf %184, %183 : vector<1x128xf32>
    %186 = arith.divf %184, %185 : vector<1x128xf32>
    %187 = math.tanh %181 : vector<1x128xf32>
    %188 = vector.extract_strided_slice %186 {offsets = [0, 0], sizes = [1, 32], strides = [1, 1]} : vector<1x128xf32> to vector<1x32xf32>
    %189 = vector.extract_strided_slice %186 {offsets = [0, 32], sizes = [1, 32], strides = [1, 1]} : vector<1x128xf32> to vector<1x32xf32>
    %190 = vector.extract_strided_slice %187 {offsets = [0, 64], sizes = [1, 32], strides = [1, 1]} : vector<1x128xf32> to vector<1x32xf32>
    %191 = vector.extract_strided_slice %186 {offsets = [0, 96], sizes = [1, 32], strides = [1, 1]} : vector<1x128xf32> to vector<1x32xf32>
    %192 = arith.mulf %189, %169 : vector<1x32xf32>
    %193 = arith.mulf %188, %190 : vector<1x32xf32>
    %194 = arith.addf %192, %193 : vector<1x32xf32>
    %195 = math.tanh %194 : vector<1x32xf32>
    %196 = arith.mulf %191, %195 : vector<1x32xf32>
    %c1_i32 = arith.constant 1 : i32
    %197 = vector.broadcast %c1_i32 : i32 to vector<10x1xi32>
    %198 = arith.cmpi eq, %150, %197 : vector<10x1xi32>
    %199 = vector.shape_cast %198 : vector<10x1xi1> to vector<10x1xi1>
    %200 = vector.broadcast %199 : vector<10x1xi1> to vector<10x32xi1>
    %201 = vector.shape_cast %196 : vector<1x32xf32> to vector<1x32xf32>
    %202 = vector.broadcast %201 : vector<1x32xf32> to vector<10x32xf32>
    %203 = arith.select %200, %202, %178 : vector<10x32xi1>, vector<10x32xf32>
    %204 = vector.extract_strided_slice %149 {offsets = [2, 0], sizes = [1, 128], strides = [1, 1]} : vector<10x128xf32> to vector<1x128xf32>
    %cst_57 = arith.constant dense<0.000000e+00> : vector<1x128xf32>
    %205 = tpu.matmul %196, %145, %cst_57 {dimension_numbers = #tpu.dot_dimension_numbers<[1], [0], [0], [1], [0, 0, 1, 1], [], []>} : vector<1x32xf32>, vector<32x128xf32>, vector<1x128xf32> -> vector<1x128xf32>
    %206 = arith.addf %204, %205 : vector<1x128xf32>
    %207 = arith.negf %206 : vector<1x128xf32>
    %208 = math.exp %207 : vector<1x128xf32>
    %cst_58 = arith.constant 1.000000e+00 : f32
    %209 = vector.broadcast %cst_58 : f32 to vector<1x128xf32>
    %210 = arith.addf %209, %208 : vector<1x128xf32>
    %211 = arith.divf %209, %210 : vector<1x128xf32>
    %212 = math.tanh %206 : vector<1x128xf32>
    %213 = vector.extract_strided_slice %211 {offsets = [0, 0], sizes = [1, 32], strides = [1, 1]} : vector<1x128xf32> to vector<1x32xf32>
    %214 = vector.extract_strided_slice %211 {offsets = [0, 32], sizes = [1, 32], strides = [1, 1]} : vector<1x128xf32> to vector<1x32xf32>
    %215 = vector.extract_strided_slice %212 {offsets = [0, 64], sizes = [1, 32], strides = [1, 1]} : vector<1x128xf32> to vector<1x32xf32>
    %216 = vector.extract_strided_slice %211 {offsets = [0, 96], sizes = [1, 32], strides = [1, 1]} : vector<1x128xf32> to vector<1x32xf32>
    %217 = arith.mulf %214, %194 : vector<1x32xf32>
    %218 = arith.mulf %213, %215 : vector<1x32xf32>
    %219 = arith.addf %217, %218 : vector<1x32xf32>
    %220 = math.tanh %219 : vector<1x32xf32>
    %221 = arith.mulf %216, %220 : vector<1x32xf32>
    %c2_i32 = arith.constant 2 : i32
    %222 = vector.broadcast %c2_i32 : i32 to vector<10x1xi32>
    %223 = arith.cmpi eq, %150, %222 : vector<10x1xi32>
    %224 = vector.shape_cast %223 : vector<10x1xi1> to vector<10x1xi1>
    %225 = vector.broadcast %224 : vector<10x1xi1> to vector<10x32xi1>
    %226 = vector.shape_cast %221 : vector<1x32xf32> to vector<1x32xf32>
    %227 = vector.broadcast %226 : vector<1x32xf32> to vector<10x32xf32>
    %228 = arith.select %225, %227, %203 : vector<10x32xi1>, vector<10x32xf32>
    %229 = vector.extract_strided_slice %149 {offsets = [3, 0], sizes = [1, 128], strides = [1, 1]} : vector<10x128xf32> to vector<1x128xf32>
    %cst_59 = arith.constant dense<0.000000e+00> : vector<1x128xf32>
    %230 = tpu.matmul %221, %145, %cst_59 {dimension_numbers = #tpu.dot_dimension_numbers<[1], [0], [0], [1], [0, 0, 1, 1], [], []>} : vector<1x32xf32>, vector<32x128xf32>, vector<1x128xf32> -> vector<1x128xf32>
    %231 = arith.addf %229, %230 : vector<1x128xf32>
    %232 = arith.negf %231 : vector<1x128xf32>
    %233 = math.exp %232 : vector<1x128xf32>
    %cst_60 = arith.constant 1.000000e+00 : f32
    %234 = vector.broadcast %cst_60 : f32 to vector<1x128xf32>
    %235 = arith.addf %234, %233 : vector<1x128xf32>
    %236 = arith.divf %234, %235 : vector<1x128xf32>
    %237 = math.tanh %231 : vector<1x128xf32>
    %238 = vector.extract_strided_slice %236 {offsets = [0, 0], sizes = [1, 32], strides = [1, 1]} : vector<1x128xf32> to vector<1x32xf32>
    %239 = vector.extract_strided_slice %236 {offsets = [0, 32], sizes = [1, 32], strides = [1, 1]} : vector<1x128xf32> to vector<1x32xf32>
    %240 = vector.extract_strided_slice %237 {offsets = [0, 64], sizes = [1, 32], strides = [1, 1]} : vector<1x128xf32> to vector<1x32xf32>
    %241 = vector.extract_strided_slice %236 {offsets = [0, 96], sizes = [1, 32], strides = [1, 1]} : vector<1x128xf32> to vector<1x32xf32>
    %242 = arith.mulf %239, %219 : vector<1x32xf32>
    %243 = arith.mulf %238, %240 : vector<1x32xf32>
    %244 = arith.addf %242, %243 : vector<1x32xf32>
    %245 = math.tanh %244 : vector<1x32xf32>
    %246 = arith.mulf %241, %245 : vector<1x32xf32>
    %c3_i32 = arith.constant 3 : i32
    %247 = vector.broadcast %c3_i32 : i32 to vector<10x1xi32>
    %248 = arith.cmpi eq, %150, %247 : vector<10x1xi32>
    %249 = vector.shape_cast %248 : vector<10x1xi1> to vector<10x1xi1>
    %250 = vector.broadcast %249 : vector<10x1xi1> to vector<10x32xi1>
    %251 = vector.shape_cast %246 : vector<1x32xf32> to vector<1x32xf32>
    %252 = vector.broadcast %251 : vector<1x32xf32> to vector<10x32xf32>
    %253 = arith.select %250, %252, %228 : vector<10x32xi1>, vector<10x32xf32>
    %254 = vector.extract_strided_slice %149 {offsets = [4, 0], sizes = [1, 128], strides = [1, 1]} : vector<10x128xf32> to vector<1x128xf32>
    %cst_61 = arith.constant dense<0.000000e+00> : vector<1x128xf32>
    %255 = tpu.matmul %246, %145, %cst_61 {dimension_numbers = #tpu.dot_dimension_numbers<[1], [0], [0], [1], [0, 0, 1, 1], [], []>} : vector<1x32xf32>, vector<32x128xf32>, vector<1x128xf32> -> vector<1x128xf32>
    %256 = arith.addf %254, %255 : vector<1x128xf32>
    %257 = arith.negf %256 : vector<1x128xf32>
    %258 = math.exp %257 : vector<1x128xf32>
    %cst_62 = arith.constant 1.000000e+00 : f32
    %259 = vector.broadcast %cst_62 : f32 to vector<1x128xf32>
    %260 = arith.addf %259, %258 : vector<1x128xf32>
    %261 = arith.divf %259, %260 : vector<1x128xf32>
    %262 = math.tanh %256 : vector<1x128xf32>
    %263 = vector.extract_strided_slice %261 {offsets = [0, 0], sizes = [1, 32], strides = [1, 1]} : vector<1x128xf32> to vector<1x32xf32>
    %264 = vector.extract_strided_slice %261 {offsets = [0, 32], sizes = [1, 32], strides = [1, 1]} : vector<1x128xf32> to vector<1x32xf32>
    %265 = vector.extract_strided_slice %262 {offsets = [0, 64], sizes = [1, 32], strides = [1, 1]} : vector<1x128xf32> to vector<1x32xf32>
    %266 = vector.extract_strided_slice %261 {offsets = [0, 96], sizes = [1, 32], strides = [1, 1]} : vector<1x128xf32> to vector<1x32xf32>
    %267 = arith.mulf %264, %244 : vector<1x32xf32>
    %268 = arith.mulf %263, %265 : vector<1x32xf32>
    %269 = arith.addf %267, %268 : vector<1x32xf32>
    %270 = math.tanh %269 : vector<1x32xf32>
    %271 = arith.mulf %266, %270 : vector<1x32xf32>
    %c4_i32 = arith.constant 4 : i32
    %272 = vector.broadcast %c4_i32 : i32 to vector<10x1xi32>
    %273 = arith.cmpi eq, %150, %272 : vector<10x1xi32>
    %274 = vector.shape_cast %273 : vector<10x1xi1> to vector<10x1xi1>
    %275 = vector.broadcast %274 : vector<10x1xi1> to vector<10x32xi1>
    %276 = vector.shape_cast %271 : vector<1x32xf32> to vector<1x32xf32>
    %277 = vector.broadcast %276 : vector<1x32xf32> to vector<10x32xf32>
    %278 = arith.select %275, %277, %253 : vector<10x32xi1>, vector<10x32xf32>
    %279 = vector.extract_strided_slice %149 {offsets = [5, 0], sizes = [1, 128], strides = [1, 1]} : vector<10x128xf32> to vector<1x128xf32>
    %cst_63 = arith.constant dense<0.000000e+00> : vector<1x128xf32>
    %280 = tpu.matmul %271, %145, %cst_63 {dimension_numbers = #tpu.dot_dimension_numbers<[1], [0], [0], [1], [0, 0, 1, 1], [], []>} : vector<1x32xf32>, vector<32x128xf32>, vector<1x128xf32> -> vector<1x128xf32>
    %281 = arith.addf %279, %280 : vector<1x128xf32>
    %282 = arith.negf %281 : vector<1x128xf32>
    %283 = math.exp %282 : vector<1x128xf32>
    %cst_64 = arith.constant 1.000000e+00 : f32
    %284 = vector.broadcast %cst_64 : f32 to vector<1x128xf32>
    %285 = arith.addf %284, %283 : vector<1x128xf32>
    %286 = arith.divf %284, %285 : vector<1x128xf32>
    %287 = math.tanh %281 : vector<1x128xf32>
    %288 = vector.extract_strided_slice %286 {offsets = [0, 0], sizes = [1, 32], strides = [1, 1]} : vector<1x128xf32> to vector<1x32xf32>
    %289 = vector.extract_strided_slice %286 {offsets = [0, 32], sizes = [1, 32], strides = [1, 1]} : vector<1x128xf32> to vector<1x32xf32>
    %290 = vector.extract_strided_slice %287 {offsets = [0, 64], sizes = [1, 32], strides = [1, 1]} : vector<1x128xf32> to vector<1x32xf32>
    %291 = vector.extract_strided_slice %286 {offsets = [0, 96], sizes = [1, 32], strides = [1, 1]} : vector<1x128xf32> to vector<1x32xf32>
    %292 = arith.mulf %289, %269 : vector<1x32xf32>
    %293 = arith.mulf %288, %290 : vector<1x32xf32>
    %294 = arith.addf %292, %293 : vector<1x32xf32>
    %295 = math.tanh %294 : vector<1x32xf32>
    %296 = arith.mulf %291, %295 : vector<1x32xf32>
    %c5_i32 = arith.constant 5 : i32
    %297 = vector.broadcast %c5_i32 : i32 to vector<10x1xi32>
    %298 = arith.cmpi eq, %150, %297 : vector<10x1xi32>
    %299 = vector.shape_cast %298 : vector<10x1xi1> to vector<10x1xi1>
    %300 = vector.broadcast %299 : vector<10x1xi1> to vector<10x32xi1>
    %301 = vector.shape_cast %296 : vector<1x32xf32> to vector<1x32xf32>
    %302 = vector.broadcast %301 : vector<1x32xf32> to vector<10x32xf32>
    %303 = arith.select %300, %302, %278 : vector<10x32xi1>, vector<10x32xf32>
    %304 = vector.extract_strided_slice %149 {offsets = [6, 0], sizes = [1, 128], strides = [1, 1]} : vector<10x128xf32> to vector<1x128xf32>
    %cst_65 = arith.constant dense<0.000000e+00> : vector<1x128xf32>
    %305 = tpu.matmul %296, %145, %cst_65 {dimension_numbers = #tpu.dot_dimension_numbers<[1], [0], [0], [1], [0, 0, 1, 1], [], []>} : vector<1x32xf32>, vector<32x128xf32>, vector<1x128xf32> -> vector<1x128xf32>
    %306 = arith.addf %304, %305 : vector<1x128xf32>
    %307 = arith.negf %306 : vector<1x128xf32>
    %308 = math.exp %307 : vector<1x128xf32>
    %cst_66 = arith.constant 1.000000e+00 : f32
    %309 = vector.broadcast %cst_66 : f32 to vector<1x128xf32>
    %310 = arith.addf %309, %308 : vector<1x128xf32>
    %311 = arith.divf %309, %310 : vector<1x128xf32>
    %312 = math.tanh %306 : vector<1x128xf32>
    %313 = vector.extract_strided_slice %311 {offsets = [0, 0], sizes = [1, 32], strides = [1, 1]} : vector<1x128xf32> to vector<1x32xf32>
    %314 = vector.extract_strided_slice %311 {offsets = [0, 32], sizes = [1, 32], strides = [1, 1]} : vector<1x128xf32> to vector<1x32xf32>
    %315 = vector.extract_strided_slice %312 {offsets = [0, 64], sizes = [1, 32], strides = [1, 1]} : vector<1x128xf32> to vector<1x32xf32>
    %316 = vector.extract_strided_slice %311 {offsets = [0, 96], sizes = [1, 32], strides = [1, 1]} : vector<1x128xf32> to vector<1x32xf32>
    %317 = arith.mulf %314, %294 : vector<1x32xf32>
    %318 = arith.mulf %313, %315 : vector<1x32xf32>
    %319 = arith.addf %317, %318 : vector<1x32xf32>
    %320 = math.tanh %319 : vector<1x32xf32>
    %321 = arith.mulf %316, %320 : vector<1x32xf32>
    %c6_i32 = arith.constant 6 : i32
    %322 = vector.broadcast %c6_i32 : i32 to vector<10x1xi32>
    %323 = arith.cmpi eq, %150, %322 : vector<10x1xi32>
    %324 = vector.shape_cast %323 : vector<10x1xi1> to vector<10x1xi1>
    %325 = vector.broadcast %324 : vector<10x1xi1> to vector<10x32xi1>
    %326 = vector.shape_cast %321 : vector<1x32xf32> to vector<1x32xf32>
    %327 = vector.broadcast %326 : vector<1x32xf32> to vector<10x32xf32>
    %328 = arith.select %325, %327, %303 : vector<10x32xi1>, vector<10x32xf32>
    %329 = vector.extract_strided_slice %149 {offsets = [7, 0], sizes = [1, 128], strides = [1, 1]} : vector<10x128xf32> to vector<1x128xf32>
    %cst_67 = arith.constant dense<0.000000e+00> : vector<1x128xf32>
    %330 = tpu.matmul %321, %145, %cst_67 {dimension_numbers = #tpu.dot_dimension_numbers<[1], [0], [0], [1], [0, 0, 1, 1], [], []>} : vector<1x32xf32>, vector<32x128xf32>, vector<1x128xf32> -> vector<1x128xf32>
    %331 = arith.addf %329, %330 : vector<1x128xf32>
    %332 = arith.negf %331 : vector<1x128xf32>
    %333 = math.exp %332 : vector<1x128xf32>
    %cst_68 = arith.constant 1.000000e+00 : f32
    %334 = vector.broadcast %cst_68 : f32 to vector<1x128xf32>
    %335 = arith.addf %334, %333 : vector<1x128xf32>
    %336 = arith.divf %334, %335 : vector<1x128xf32>
    %337 = math.tanh %331 : vector<1x128xf32>
    %338 = vector.extract_strided_slice %336 {offsets = [0, 0], sizes = [1, 32], strides = [1, 1]} : vector<1x128xf32> to vector<1x32xf32>
    %339 = vector.extract_strided_slice %336 {offsets = [0, 32], sizes = [1, 32], strides = [1, 1]} : vector<1x128xf32> to vector<1x32xf32>
    %340 = vector.extract_strided_slice %337 {offsets = [0, 64], sizes = [1, 32], strides = [1, 1]} : vector<1x128xf32> to vector<1x32xf32>
    %341 = vector.extract_strided_slice %336 {offsets = [0, 96], sizes = [1, 32], strides = [1, 1]} : vector<1x128xf32> to vector<1x32xf32>
    %342 = arith.mulf %339, %319 : vector<1x32xf32>
    %343 = arith.mulf %338, %340 : vector<1x32xf32>
    %344 = arith.addf %342, %343 : vector<1x32xf32>
    %345 = math.tanh %344 : vector<1x32xf32>
    %346 = arith.mulf %341, %345 : vector<1x32xf32>
    %c7_i32 = arith.constant 7 : i32
    %347 = vector.broadcast %c7_i32 : i32 to vector<10x1xi32>
    %348 = arith.cmpi eq, %150, %347 : vector<10x1xi32>
    %349 = vector.shape_cast %348 : vector<10x1xi1> to vector<10x1xi1>
    %350 = vector.broadcast %349 : vector<10x1xi1> to vector<10x32xi1>
    %351 = vector.shape_cast %346 : vector<1x32xf32> to vector<1x32xf32>
    %352 = vector.broadcast %351 : vector<1x32xf32> to vector<10x32xf32>
    %353 = arith.select %350, %352, %328 : vector<10x32xi1>, vector<10x32xf32>
    %354 = vector.extract_strided_slice %149 {offsets = [8, 0], sizes = [1, 128], strides = [1, 1]} : vector<10x128xf32> to vector<1x128xf32>
    %cst_69 = arith.constant dense<0.000000e+00> : vector<1x128xf32>
    %355 = tpu.matmul %346, %145, %cst_69 {dimension_numbers = #tpu.dot_dimension_numbers<[1], [0], [0], [1], [0, 0, 1, 1], [], []>} : vector<1x32xf32>, vector<32x128xf32>, vector<1x128xf32> -> vector<1x128xf32>
    %356 = arith.addf %354, %355 : vector<1x128xf32>
    %357 = arith.negf %356 : vector<1x128xf32>
    %358 = math.exp %357 : vector<1x128xf32>
    %cst_70 = arith.constant 1.000000e+00 : f32
    %359 = vector.broadcast %cst_70 : f32 to vector<1x128xf32>
    %360 = arith.addf %359, %358 : vector<1x128xf32>
    %361 = arith.divf %359, %360 : vector<1x128xf32>
    %362 = math.tanh %356 : vector<1x128xf32>
    %363 = vector.extract_strided_slice %361 {offsets = [0, 0], sizes = [1, 32], strides = [1, 1]} : vector<1x128xf32> to vector<1x32xf32>
    %364 = vector.extract_strided_slice %361 {offsets = [0, 32], sizes = [1, 32], strides = [1, 1]} : vector<1x128xf32> to vector<1x32xf32>
    %365 = vector.extract_strided_slice %362 {offsets = [0, 64], sizes = [1, 32], strides = [1, 1]} : vector<1x128xf32> to vector<1x32xf32>
    %366 = vector.extract_strided_slice %361 {offsets = [0, 96], sizes = [1, 32], strides = [1, 1]} : vector<1x128xf32> to vector<1x32xf32>
    %367 = arith.mulf %364, %344 : vector<1x32xf32>
    %368 = arith.mulf %363, %365 : vector<1x32xf32>
    %369 = arith.addf %367, %368 : vector<1x32xf32>
    %370 = math.tanh %369 : vector<1x32xf32>
    %371 = arith.mulf %366, %370 : vector<1x32xf32>
    %c8_i32_71 = arith.constant 8 : i32
    %372 = vector.broadcast %c8_i32_71 : i32 to vector<10x1xi32>
    %373 = arith.cmpi eq, %150, %372 : vector<10x1xi32>
    %374 = vector.shape_cast %373 : vector<10x1xi1> to vector<10x1xi1>
    %375 = vector.broadcast %374 : vector<10x1xi1> to vector<10x32xi1>
    %376 = vector.shape_cast %371 : vector<1x32xf32> to vector<1x32xf32>
    %377 = vector.broadcast %376 : vector<1x32xf32> to vector<10x32xf32>
    %378 = arith.select %375, %377, %353 : vector<10x32xi1>, vector<10x32xf32>
    %379 = vector.extract_strided_slice %149 {offsets = [9, 0], sizes = [1, 128], strides = [1, 1]} : vector<10x128xf32> to vector<1x128xf32>
    %cst_72 = arith.constant dense<0.000000e+00> : vector<1x128xf32>
    %380 = tpu.matmul %371, %145, %cst_72 {dimension_numbers = #tpu.dot_dimension_numbers<[1], [0], [0], [1], [0, 0, 1, 1], [], []>} : vector<1x32xf32>, vector<32x128xf32>, vector<1x128xf32> -> vector<1x128xf32>
    %381 = arith.addf %379, %380 : vector<1x128xf32>
    %382 = arith.negf %381 : vector<1x128xf32>
    %383 = math.exp %382 : vector<1x128xf32>
    %cst_73 = arith.constant 1.000000e+00 : f32
    %384 = vector.broadcast %cst_73 : f32 to vector<1x128xf32>
    %385 = arith.addf %384, %383 : vector<1x128xf32>
    %386 = arith.divf %384, %385 : vector<1x128xf32>
    %387 = math.tanh %381 : vector<1x128xf32>
    %388 = vector.extract_strided_slice %386 {offsets = [0, 0], sizes = [1, 32], strides = [1, 1]} : vector<1x128xf32> to vector<1x32xf32>
    %389 = vector.extract_strided_slice %386 {offsets = [0, 32], sizes = [1, 32], strides = [1, 1]} : vector<1x128xf32> to vector<1x32xf32>
    %390 = vector.extract_strided_slice %387 {offsets = [0, 64], sizes = [1, 32], strides = [1, 1]} : vector<1x128xf32> to vector<1x32xf32>
    %391 = vector.extract_strided_slice %386 {offsets = [0, 96], sizes = [1, 32], strides = [1, 1]} : vector<1x128xf32> to vector<1x32xf32>
    %392 = arith.mulf %389, %369 : vector<1x32xf32>
    %393 = arith.mulf %388, %390 : vector<1x32xf32>
    %394 = arith.addf %392, %393 : vector<1x32xf32>
    %395 = math.tanh %394 : vector<1x32xf32>
    %396 = arith.mulf %391, %395 : vector<1x32xf32>
    %c9_i32 = arith.constant 9 : i32
    %397 = vector.broadcast %c9_i32 : i32 to vector<10x1xi32>
    %398 = arith.cmpi eq, %150, %397 : vector<10x1xi32>
    %399 = vector.shape_cast %398 : vector<10x1xi1> to vector<10x1xi1>
    %400 = vector.broadcast %399 : vector<10x1xi1> to vector<10x32xi1>
    %401 = vector.shape_cast %396 : vector<1x32xf32> to vector<1x32xf32>
    %402 = vector.broadcast %401 : vector<1x32xf32> to vector<10x32xf32>
    %403 = arith.select %400, %402, %378 : vector<10x32xi1>, vector<10x32xf32>
    %404 = vector.extract_strided_slice %5 {offsets = [0, 256], sizes = [32, 128], strides = [1, 1]} : vector<32x384xf32> to vector<32x128xf32>
    %cst_74 = arith.constant dense<0.000000e+00> : vector<10x128xf32>
    %405 = tpu.matmul %403, %404, %cst_74 {dimension_numbers = #tpu.dot_dimension_numbers<[1], [0], [0], [1], [0, 0, 1, 1], [], []>} : vector<10x32xf32>, vector<32x128xf32>, vector<10x128xf32> -> vector<10x128xf32>
    %406 = vector.extract_strided_slice %6 {offsets = [5, 0], sizes = [1, 128], strides = [1, 1]} : vector<6x128xf32> to vector<1x128xf32>
    %407 = vector.broadcast %406 : vector<1x128xf32> to vector<10x128xf32>
    %408 = arith.addf %405, %407 : vector<10x128xf32>
    %c0_75 = arith.constant 0 : index
    %c0_76 = arith.constant 0 : index
    %409 = vector.load %arg7[%c0_75, %c0_76] : memref<10x128xf32, #tpu.memory_space<vmem>>, vector<10x128xf32>
    tpu.vector_store %arg7[%c0_75, %c0_76], %408 {strides = array<i32>} : memref<10x128xf32, #tpu.memory_space<vmem>>, vector<10x128xf32>,
    return
  }
}

</mosaic_0001>

<bundles_post_ra>
// kernel: hgnn_forward.1
= control target key start
LH: loop header
LB: loop body
LE: loop exit
PB: predicated region body
PF: predicated region fallthrough
CT: control target
= control target key end

     0   :  { %12 = vsyncpa [#allocation3], 0  ;;  %s4134_s0 = inlined_call_operand.vmem [shape: f32[6,8], index: 0, kind: input, shape index: {}]   ;;  %s4135_s1 = inlined_call_operand.vmem [shape: f32[4,6], index: 1, kind: input, shape index: {}]   ;;  %s4136_s2 = inlined_call_operand.hbm [shape: f32[8,12], index: 2, kind: input, shape index: {}]   ;;  %s4137_s3 = inlined_call_operand.hbm [shape: f32[12,64], index: 3, kind: input, shape index: {}]   ;;  %s4138_s4 = inlined_call_operand.hbm [shape: f32[32,160], index: 4, kind: input, shape index: {}]   ;;  %s4139_s5 = inlined_call_operand.hbm [shape: f32[32,384], index: 5, kind: input, shape index: {}]   ;;  %s4140_s6 = inlined_call_operand.hbm [shape: f32[6,128], index: 6, kind: input, shape index: {}]   ;;  %s4141_s7 = inlined_call_operand.vmem [shape: f32[10,128], index: 7, kind: output, shape index: {}]  }
   0x1   :  { %13 = vsyncpa [#allocation5], 0 }
   0x2   :  { %14 = vsyncpa [#allocation8], 0  ;;  %s3640_s24 = smov [#allocation4]   ;;  %s3524_s28 = scalar_lea.hbm %s4137_s3, 256 }
   0x3   :  { %s34_s25 = sshll.u32 %s3640_s24, 4  ;;  %p3525_p0 = scmp.ne.s32.totalorder %s4137_s3, %s3524_s28  ;;  %s35_s25 = int_to_ptr.vmem [resolvable:$true] %s34_s25 }
   0x4   :  { %p3528_p1 = scmp.lt.u32.totalorder %s3524_s28, %s4137_s3 }
   0x6   :  { %p3530_p2 = pnand %p3528_p1, %p3525_p0 }
   0x8   :  { %3533 = shalt.err (!%p3530_p2)
}
   0x9   :  { %s3534_s10 = scalar_lea.vmem %s35_s25, 256  ;;  %p3539_p4 = scmp.lt.s32.totalorder %s35_s25, %s35_s25 }
   0xa   :  { %p3535_p3 = scmp.ne.s32.totalorder %s35_s25, %s3534_s10  ;;  %p3540_p5 = scmp.lt.s32.totalorder %s3534_s10, %s3534_s10 }
   0xc   :  { %p3541_p6 = por %p3540_p5, %p3539_p4 }
   0xe   :  { %p3542_p7 = pnand %p3541_p6, %p3535_p3 }
  0x10   :  { %3545 = shalt.err (!%p3542_p7)
}
  0x11   :  { %s3641_s11 = smov 128   ;;  %s3642_s12 = smov 8  }
  0x12   :  { %40 = dma.hbm_to_vmem [thread:$0]  %s4137_s3, 256, %s35_s25, [#allocation5], %s3641_s11, %s3641_s11, %s3642_s12  }
  0x13   :  { %s3643_s15 = smov [#allocation7]   ;;  %s3546_s19 = scalar_lea.hbm %s4139_s5, 1536 }
  0x14   :  { %s58_s16 = sshll.u32 %s3643_s15, 4  ;;  %p3547_p8 = scmp.ne.s32.totalorder %s4139_s5, %s3546_s19  ;;  %s59_s16 = int_to_ptr.vmem [resolvable:$true] %s58_s16 }
  0x15   :  { %p3550_p9 = scmp.lt.u32.totalorder %s3546_s19, %s4139_s5 }
  0x17   :  { %p3552_p10 = pnand %p3550_p9, %p3547_p8 }
  0x19   :  { %3555 = shalt.err (!%p3552_p10)
}
  0x1a   :  { %s3556_s24 = scalar_lea.vmem %s59_s16, 1536  ;;  %p3561_p12 = scmp.lt.s32.totalorder %s59_s16, %s59_s16 }
  0x1b   :  { %p3557_p11 = scmp.ne.s32.totalorder %s59_s16, %s3556_s24  ;;  %p3562_p13 = scmp.lt.s32.totalorder %s3556_s24, %s3556_s24 }
  0x1d   :  { %p3563_p0 = por %p3562_p13, %p3561_p12 }
  0x1f   :  { %p3564_p1 = pnand %p3563_p0, %p3557_p11 }
  0x21   :  { %3567 = shalt.err (!%p3564_p1)
}
  0x22   :  { %s3644_s3 = smov 384   ;;  %s3645_s25 = smov 24  }
  0x23   :  { %64 = dma.hbm_to_vmem [thread:$0]  %s4139_s5, 1536, %s59_s16, [#allocation8], %s3644_s3, %s3644_s3, %s3645_s25  }
  0x24   :  { %s3646_s28 = smov [#allocation2]   ;;  %s3647_s30 = smov [#allocation6]  }
  0x25   :  { %s25_s29 = sshll.u32 %s3646_s28, 4  ;;  %s46_s8 = sshll.u32 %s3647_s30, 4  ;;  %s26_s29 = int_to_ptr.vmem [resolvable:$true] %s25_s29  ;;  %s3722_s8 = int_to_ptr.vmem [resolvable:$true] %s46_s8 }
  0x26   :  { %s3568_s11 = scalar_lea.hbm %s4136_s2, 128 }
  0x27   :  { %p3569_p2 = scmp.ne.s32.totalorder %s4136_s2, %s3568_s11  ;;  %p3572_p3 = scmp.lt.u32.totalorder %s3568_s11, %s4136_s2 }
  0x29   :  { %p3574_p4 = pnand %p3572_p3, %p3569_p2 }
  0x2b   :  { %3577 = shalt.err (!%p3574_p4)
}
  0x2c   :  { %s3578_s5 = scalar_lea.vmem %s26_s29, 128  ;;  %p3583_p6 = scmp.lt.s32.totalorder %s26_s29, %s26_s29 }
  0x2d   :  { %p3579_p5 = scmp.ne.s32.totalorder %s26_s29, %s3578_s5  ;;  %p3584_p7 = scmp.lt.s32.totalorder %s3578_s5, %s3578_s5 }
  0x2f   :  { %p3585_p8 = por %p3584_p7, %p3583_p6 }
  0x31   :  { %p3586_p9 = pnand %p3585_p8, %p3579_p5 }
  0x33   :  { %3589 = shalt.err (!%p3586_p9)
}
  0x34   :  { %28 = dma.hbm_to_vmem [thread:$0]  %s4136_s2, 128, %s26_s29, [#allocation3]  }
  0x35   :  { %s3590_s20 = scalar_lea.hbm %s4138_s4, 1024 }
  0x36   :  { %p3591_p10 = scmp.ne.s32.totalorder %s4138_s4, %s3590_s20  ;;  %p3594_p11 = scmp.lt.u32.totalorder %s3590_s20, %s4138_s4 }
  0x38   :  { %p3596_p12 = pnand %p3594_p11, %p3591_p10 }
  0x3a   :  { %3599 = shalt.err (!%p3596_p12)
}
  0x3b   :  { %s3600_s3 = scalar_lea.vmem %s3722_s8, 1024  ;;  %p3605_p0 = scmp.lt.s32.totalorder %s3722_s8, %s3722_s8 }
  0x3c   :  { %p3601_p13 = scmp.ne.s32.totalorder %s3722_s8, %s3600_s3  ;;  %p3606_p1 = scmp.lt.s32.totalorder %s3600_s3, %s3600_s3 }
  0x3e   :  { %p3607_p2 = por %p3606_p1, %p3605_p0 }
  0x40   :  { %p3608_p3 = pnand %p3607_p2, %p3601_p13 }
  0x42   :  { %3611 = shalt.err (!%p3608_p3)
}
  0x43   :  { %s3648_s2 = smov 256   ;;  %s3649_s25 = smov 16  }
  0x44   :  { %52 = dma.hbm_to_vmem [thread:$0]  %s4138_s4, 1024, %s3722_s8, [#allocation5], %s3648_s2, %s3648_s2, %s3649_s25  }
  0x45   :  { %s3650_s28 = smov [#allocation9]   ;;  %s3612_s10 = scalar_lea.hbm %s4140_s6, 128 }
  0x46   :  { %s71_s29 = sshll.u32 %s3650_s28, 4  ;;  %p3613_p4 = scmp.ne.s32.totalorder %s4140_s6, %s3612_s10  ;;  %s72_s29 = int_to_ptr.vmem [resolvable:$true] %s71_s29 }
  0x47   :  { %p3616_p5 = scmp.lt.u32.totalorder %s3612_s10, %s4140_s6 }
  0x49   :  { %p3618_p6 = pnand %p3616_p5, %p3613_p4 }
  0x4b   :  { %3621 = shalt.err (!%p3618_p6)
}
  0x4c   :  { %s3622_s15 = scalar_lea.vmem %s72_s29, 128  ;;  %p3627_p8 = scmp.lt.s32.totalorder %s72_s29, %s72_s29 }
  0x4d   :  { %p3623_p7 = scmp.ne.s32.totalorder %s72_s29, %s3622_s15  ;;  %p3628_p9 = scmp.lt.s32.totalorder %s3622_s15, %s3622_s15 }
  0x4f   :  { %p3629_p10 = por %p3628_p9, %p3627_p8 }
  0x51   :  { %p3630_p11 = pnand %p3629_p10, %p3623_p7 }
  0x53   :  { %3633 = shalt.err (!%p3630_p11)
}
  0x54   :  { %74 = dma.hbm_to_vmem [thread:$0]  %s4140_s6, 128, %s72_s29, [#allocation8]  }
  0x55   :  { %3634 = dma.done.wait [#allocation3], 128  }
  0x56   :  { %3635 = vsyncadd [#allocation3], 4294967168 }
  0x57   :  { %3636 = dma.done.wait [#allocation5], 1280  }
  0x58   :  { %3637 = vsyncadd [#allocation5], 4294966016 }
  0x59   :  { %3638 = dma.done.wait [#allocation8], 1664  }
  0x5a   :  { %3639 = vsyncadd [#allocation8], 4294965632  ;;  %v3651_v0 = vmov 0.0   ;;  %vm3652_vm0 = vmmov 0   ;;  %v3653_v1 = vmov 0.0|0.0   ;;  %vm198_vm1 = vcmask 1043456  }
  0x5b   :  { %2979 = vmatprep.subr.mxu0 %v3651_v0  ;;  %2981 = vmatprep.mubr.msk.f32.mxu0 %vm3652_vm0, %v3651_v0  ;;  %vm116_vm2 = vcmask 64512   ;;  %v92_v2 = vld [vmem:[#allocation2] sm:$0xff]  ;;  %v90_v3 = vld [vmem:[%s4134_s0] sm:$0x3f]  ;;  %v93_v4 = vld [vmem:[#allocation4] sm:$0xff]  ;;  %vm3654_vm3 = vmmov 1   ;;  %v190_v24 = vlaneseq }
  0x5c   :  { %3217 = vmatprep.subr.bf16.mxu1 %v3653_v1  ;;  %2988 = vmatprep.mubr.msk.f32.mxu1 %vm3652_vm0, %v3651_v0  ;;  %v94_v5 = vld [vmem:[#allocation4 + $0x8] sm:$0xf]  ;;  %vm3219_vm4 = vmpackc.low %vm198_vm1, %vm3654_vm3  ;;  %v95_v7 = vld [vmem:[#allocation6] sm:$0xff]  ;;  %s3655_s0 = smov 32   ;;  %vm194_vm5 = vcmask 97280   ;;  %vm289_vm6 = vcmask 261120  }
  0x5d   :  { %2980 = vmatpush3.msra.mxu0 %v92_v2  ;;  %v3218_v6 = vpack.c.bf16 %v94_v5, %v93_v4  ;;  %v97_v8 = vld [vmem:[#allocation6 + $0x10] sm:$0xff]  ;;  %v99_v9 = vld [vmem:[#allocation6 + $0x20] sm:$0xff]  ;;  %v3783_v25 = vshrl.u32 %v190_v24, 7  ;;  %vm371_vm7 = vcmask 1045504   ;;  %vm367_vm8 = vcmask 48128   ;;  %vm3849_vm1 = vmpackc.low %vm289_vm6, %vm289_vm6  ;;  %s3657_s18 = smov 64  }
  0x5e   :  { %2982 = vmatmul.mubr.msk.f32.vlgmr.msra.gmra.mrb[0].mxu0 %vm116_vm2, %v90_v3  ;;  %3221 = vmatprep.subr.bf16.mxu0 %v3653_v1  ;;  %v3391_v10 = vpack.i.bf16 %v97_v8, %v95_v7  ;;  %v3227_v11 = vpack.c.bf16 %v97_v8, %v95_v7  ;;  %v101_v12 = vld [vmem:[#allocation6 + $0x30] sm:$0xff]  ;;  %v3788_v27 = vld [vmem:[#allocation9] sm:$0x3f]  ;;  %v3807_v49 = vand.u32 127, %v190_v24 }
  0x5f   :  { %2999 = vmatprep.mubr.msk.f32.mxu0 %vm3652_vm0, %v3651_v0  ;;  %3220 = vmatpush3.bf16.msk.msra.mxu1 %vm3219_vm4, %v3218_v6  ;;  %v3396_v13 = vpack.i.bf16 %v101_v12, %v99_v9  ;;  %v3786_v26 = vsub.s32 0, %v3783_v25  ;;  %v91_v33 = vld [vmem:[%s4135_s1] sm:$0xf]  ;;  %v3798_v36 = vsub.s32 1, %v3783_v25  ;;  %v3231_v37 = vpack.c.bf16 %v101_v12, %v99_v9  ;;  %s3656_s1 = smov 96  }
  0x60   :  { %3002 = vmatprep.subr.mxu1 %v3651_v0  ;;  %3392 = vrot.lane.b32.xlu0 %v3391_v10, %s3655_s0  ;;  %v454_v48 = vsub.s32 2, %v3783_v25  ;;  %vm1151_vm9 = vcmp.ge.s32.totalorder %v3807_v49, 24  ;;  %vm1152_vm10 = vcmp.lt.s32.totalorder %v3807_v49, 32  ;;  %vm672_vm11 = vcmp.ge.s32.totalorder %v3807_v49, 8 }
  0x61   :  { %v193_v28 = vrot.slane %v3788_v27, %v3786_v26  ;;  %v366_v38 = vrot.slane %v3788_v27, %v3798_v36  ;;  %vm673_vm12 = vcmp.lt.s32.totalorder %v3807_v49, 16  ;;  %vm3816_vm13 = vmand %vm1151_vm9, %vm1152_vm10  ;;  %vm543_vm14 = vcmp.lt.s32.totalorder %v3807_v49, 8 }
  0x62   :  { %v455_v50 = vrot.slane %v3788_v27, %v454_v48  ;;  %vm3823_vm15 = vmand %vm672_vm11, %vm673_vm12  ;;  %vm953_vm2 = vcmp.ge.s32.totalorder %v3807_v49, 16  ;;  %vm954_vm3 = vcmp.lt.s32.totalorder %v3807_v49, 24 }
  0x63   :  { %vm3872_vm4 = vmand %vm953_vm2, %vm954_vm3  ;;  %vm2095_vm2 = vcmp.eq.s32.totalorder %v3783_v25, 4  ;;  %vm2214_vm3 = vcmp.eq.s32.totalorder %v3783_v25, 5 }
  0x64   :  { %3397 = vrot.lane.b32.xlu0 %v3396_v13, %s3655_s0 }
  0xd2   :  { %v3393_v14 = vpop.permute.xlu0 %3392 }
  0xd3   :  { %v3395_v15 = vunpack.i.h.bf16 %v3393_v14  ;;  %v3394_v16 = vunpack.i.l.bf16 %v3393_v14 }
  0xd5   :  { %v3222_v17 = vpack.c.bf16 %v3395_v15, %v3394_v16 }
  0xd6   :  { %v3398_v18 = vpop.permute.xlu0 %3397 }
  0xd7   :  { %v3400_v19 = vunpack.i.h.bf16 %v3398_v18  ;;  %v3399_v20 = vunpack.i.l.bf16 %v3398_v18  ;;  %3223 = vmatpush3.bf16.msra.mxu0 %v3222_v17 }
  0xd8   :  { %3224 = vmatprep.subr.bf16.mxu0 %v3653_v1 }
  0xd9   :  { %v3225_v21 = vpack.c.bf16 %v3400_v19, %v3399_v20 }
  0xdb   :  { %3226 = vmatpush3.bf16.msra.mxu0 %v3225_v21 }
 0x131   :  { %v186_v22 = vpop.f32.mrb[0].mxu0 }
 0x132   :  { %v2983_v23 = vpop.f32.mrb[1].mxu0  ;;  %2989 = vmatmul.mubr.msk.f32.vlgmr.msra.gmra.mrb[0].mxu1 %vm194_vm5, %v186_v22  ;;  %vm652_vm5 = vcmask 74752  }
 0x133   :  { %3004 = vmatprep.mubr.msk.f32.mxu1 %vm3652_vm0, %v3651_v0 }
 0x205   :  { %v268_v29 = vpop.f32.mrb[0].mxu1 }
 0x206   :  { %v269_v30 = vadd.f32 %v268_v29, %v193_v28  ;;  %v2990_v31 = vpop.f32.mrb[1].mxu1 }
 0x208   :  { %v272_v32 = vmax.f32 %v269_v30, 0.0 }
 0x20a   :  { %3000 = vmatmul.mubr.msk.f32.vlgmr.msra.gmra.mrb[2].mxu0 %vm289_vm6, %v272_v32 }
 0x2dd   :  { %v359_v34 = vpop.f32.mrb[2].mxu0 }
 0x2de   :  { %v3001_v35 = vpop.f32.mrb[3].mxu0  ;;  %3003 = vmatpush3.msk.msra.mxu1 %vm371_vm7, %v359_v34 }
 0x2df   :  { %3005 = vmatmul.mubr.msk.f32.vlgmr.msra.gmra.mrb[2].mxu1 %vm367_vm8, %v91_v33  ;;  %3228 = vmatprep.subr.bf16.mxu1 %v3227_v11  ;;  %vm790_vm8 = vcmask 1041408  }
 0x2e0   :  { %3230 = vmatpush3.bf16.msra.mxu1 %v3227_v11  ;;  %vm3248_vm9 = vmpackc.low %vm790_vm8, %vm3823_vm15 }
 0x2e1   :  { %3232 = vmatprep.subr.bf16.mxu1 %v3231_v37  ;;  %vm3254_vm10 = vmpackc.low %vm790_vm8, %vm543_vm14 }
 0x2e2   :  { %vm3266_vm11 = vmpackc.low %vm790_vm8, %vm3872_vm4 }
 0x2e3   :  { %vm3278_vm12 = vmpackc.low %vm790_vm8, %vm3816_vm13 }
 0x2e4   :  { %3234 = vmatpush3.bf16.msra.mxu1 %v3231_v37 }
 0x3b2   :  { %v441_v39 = vpop.f32.mrb[2].mxu1 }
 0x3b3   :  { %v442_v40 = vadd.f32 %v441_v39, %v366_v38  ;;  %v3006_v41 = vpop.f32.mrb[3].mxu1 }
 0x3b5   :  { %v445_v42 = vmax.f32 %v442_v40, 0.0 }
 0x3b7   :  { %v447_v43 = vrot.slane %v445_v42, 2 }
 0x3b9   :  { %448 = vrot.lane.b32.xlu1 %v447_v43, %s3655_s0 }
 0x42b   :  { %v449_v44 = vpop.permute.xlu1 %448 }
 0x42c   :  { %v451_v45 = vsel %vm371_vm7, %v272_v32, %v449_v44  ;;  %459 = vrot.lane.b32.xlu0 %v449_v44, %s3656_s1  ;;  %vm648_vm7 = vcmask 80896  }
 0x42d   :  { %457 = vrot.lane.b32.xlu1 %v451_v45, %s3656_s1 }
 0x49e   :  { %v460_v47 = vpop.permute.xlu0 %459 }
 0x49f   :  { %v458_v46 = vpop.permute.xlu1 %457 }
 0x4a0   :  { %3015 = vmatprep.mubr.msk.f32.mxu1 %vm289_vm6, %v458_v46 }
 0x4a1   :  { %3016 = vmatmul.mubr.msk.f32.vlgmr.msra.gmra.mrb[4].mxu1 %vm289_vm6, %v460_v47 }
 0x574   :  { %v3017_v51 = vpop.f32.mrb[4].mxu1 }
 0x575   :  { %v3820_v53 = vadd.f32 %v3017_v51, %v455_v50  ;;  %v531_v54 = vpop.f32.mrb[5].mxu1 }
 0x576   :  { %v3827_v56 = vadd.f32 %v531_v54, %v455_v50 }
 0x577   :  { %v1157_v57 = vsel %vm3816_vm13, %v3820_v53, 0.0  ;;  %v548_v7 = vsel %vm543_vm14, %v3820_v53, 0.0  ;;  %v678_v8 = vsel %vm3823_vm15, %v3820_v53, 0.0  ;;  %v959_v10 = vsel %vm3872_vm4, %v3820_v53, 0.0 }
 0x578   :  { %v547_v58 = vsel %vm543_vm14, %v3827_v56, 0.0  ;;  %v677_v59 = vsel %vm3823_vm15, %v3827_v56, 0.0  ;;  %v3401_v60 = vpack.i.bf16 %v3820_v53, %v3827_v56  ;;  %v3406_v61 = vpack.i.bf16 %v3827_v56, %v3820_v53 }
 0x579   :  { %3022 = vmatprep.mubr.msk.f32.mxu0 %vm289_vm6, %v547_v58  ;;  %3029 = vmatprep.mubr.msk.f32.mxu1 %vm289_vm6, %v677_v59  ;;  %v1156_v62 = vsel %vm3816_vm13, %v3827_v56, 0.0  ;;  %v958_v9 = vsel %vm3872_vm4, %v3827_v56, 0.0 }
 0x57a   :  { %3402 = vrot.lane.b32.xlu1 %v3401_v60, %s3656_s1 }
 0x5ec   :  { %v3403_v63 = vpop.permute.xlu1 %3402 }
 0x5ed   :  { %v3405_v2 = vunpack.i.h.bf16 %v3403_v63  ;;  %v3404_v3 = vunpack.i.l.bf16 %v3403_v63 }
 0x5ef   :  { %v3853_v5 = vpack.c.bf16 %v3405_v2, %v3404_v3 }
 0x5f1   :  { %3237 = vmatprep.subr.msk.bf16.mxu0 %vm3849_vm1, %v3853_v5  ;;  %3243 = vmatprep.subr.msk.bf16.mxu1 %vm3849_vm1, %v3853_v5 }
 0x5f2   :  { %3240 = vmatpush3.bf16.xpose.msk.msra.mxu0 %vm3849_vm1, %v3853_v5  ;;  %3246 = vmatpush3.bf16.xpose.msk.msra.mxu1 %vm3849_vm1, %v3853_v5 }
 0x5f3   :  { %3261 = vmatprep.subr.msk.bf16.mxu1 %vm3849_vm1, %v3853_v5 }
 0x5f9   :  { %3023 = vmatmul.mubr.msk.f32.vlgmr.msra.gmra.mrb[4].mxu0 %vm289_vm6, %v548_v7  ;;  %3030 = vmatmul.mubr.msk.f32.vlgmr.msra.gmra.mrb[6].mxu1 %vm289_vm6, %v678_v8 }
 0x5fa   :  { %3264 = vmatpush3.bf16.xpose.msk.msra.mxu1 %vm3849_vm1, %v3853_v5  ;;  %3050 = vmatprep.mubr.msk.f32.mxu1 %vm289_vm6, %v958_v9 }
 0x601   :  { %3051 = vmatmul.mubr.msk.f32.vlgmr.msra.gmra.mrb[8].mxu1 %vm289_vm6, %v959_v10 }
 0x6cc   :  { %v3024_v11 = vpop.f32.mrb[4].mxu0  ;;  %v3031_v12 = vpop.f32.mrb[6].mxu1 }
 0x6cd   :  { %v639_v13 = vpop.f32.mrb[5].mxu0  ;;  %v753_v14 = vpop.f32.mrb[7].mxu1  ;;  %v765_v15 = vsel %vm652_vm5, %v3031_v12, -inf  ;;  %v653_v21 = vsel %vm652_vm5, %v3024_v11, -inf }
 0x6ce   :  { %766 = vmax.xlane.f32.xlu1 %v765_v15  ;;  %v762_v16 = vsel %vm648_vm7, %v753_v14, -inf  ;;  %v649_v17 = vsel %vm648_vm7, %v639_v13, -inf }
 0x6cf   :  { %763 = vmax.xlane.f32.xlu0 %v762_v16 }
 0x6d3   :  { %650 = vmax.xlane.f32.xlu0 %v649_v17 }
 0x6d4   :  { %v3052_v18 = vpop.f32.mrb[8].mxu1 }
 0x6d5   :  { %v1034_v19 = vpop.f32.mrb[9].mxu1  ;;  %v1046_v22 = vsel %vm652_vm5, %v3052_v18, -inf }
 0x6d6   :  { %v1043_v20 = vsel %vm648_vm7, %v1034_v19, -inf }
 0x6d7   :  { %1044 = vmax.xlane.f32.xlu1 %v1043_v20  ;;  %654 = vmax.xlane.f32.xlu0 %v653_v21 }
 0x6db   :  { %1047 = vmax.xlane.f32.xlu0 %v1046_v22 }
 0x75b   :  { %v767_v23 = vpop.xlane.xlu1 %766 }
 0x75c   :  { %v769_v24 = vsub.f32 %v3031_v12, %v767_v23  ;;  %v764_v28 = vpop.xlane.xlu0 %763 }
 0x75d   :  { %v768_v29 = vsub.f32 %v753_v14, %v764_v28 }
 0x75e   :  { %v772_v30 = vmul.f32 1.442695, %v769_v24 }
 0x75f   :  { %v770_v31 = vmul.f32 1.442695, %v768_v29 }
 0x760   :  { %3411 = vpow2.f32 %v772_v30  ;;  %v651_v32 = vpop.xlane.xlu0 %650 }
 0x761   :  { %3413 = vpow2.f32 %v770_v31  ;;  %v656_v33 = vsub.f32 %v639_v13, %v651_v32 }
 0x763   :  { %v658_v34 = vmul.f32 1.442695, %v656_v33 }
 0x764   :  { %v1045_v35 = vpop.xlane.xlu1 %1044  ;;  %v655_v37 = vpop.xlane.xlu0 %654 }
 0x765   :  { %3415 = vpow2.f32 %v658_v34  ;;  %v1049_v38 = vsub.f32 %v1034_v19, %v1045_v35  ;;  %v657_v39 = vsub.f32 %v3024_v11, %v655_v37 }
 0x767   :  { %v1051_v40 = vmul.f32 1.442695, %v1049_v38  ;;  %v660_v41 = vmul.f32 1.442695, %v657_v39 }
 0x768   :  { %v1048_v42 = vpop.xlane.xlu0 %1047 }
 0x769   :  { %3417 = vpow2.f32 %v1051_v40  ;;  %v1050_v43 = vsub.f32 %v3052_v18, %v1048_v42 }
 0x76a   :  { %v3412_v44 = vpop.eup %3411  ;;  %3419 = vpow2.f32 %v660_v41 }
 0x76b   :  { %v3414_v45 = vpop.eup %3413  ;;  %v1053_v46 = vmul.f32 1.442695, %v1050_v43  ;;  %v777_v47 = vsel %vm652_vm5, %v3412_v44, 0.0  ;;  %v96_v43 = vld [vmem:[#allocation6 + $0x8] sm:$0xff] }
 0x76c   :  { %778 = vadd.xlane.f32.xlu0 %v777_v47  ;;  %v774_v50 = vsel %vm648_vm7, %v3414_v45, 0.0  ;;  %v102_v47 = vld [vmem:[#allocation6 + $0x38] sm:$0xff] }
 0x76d   :  { %3421 = vpow2.f32 %v1053_v46  ;;  %775 = vadd.xlane.f32.xlu1 %v774_v50 }
 0x76f   :  { %v3416_v51 = vpop.eup %3415 }
 0x770   :  { %v662_v54 = vsel %vm648_vm7, %v3416_v51, 0.0 }
 0x771   :  { %663 = vadd.xlane.f32.xlu1 %v662_v54 }
 0x773   :  { %v3418_v58 = vpop.eup %3417 }
 0x774   :  { %v3420_v59 = vpop.eup %3419  ;;  %v1055_v60 = vsel %vm648_vm7, %v3418_v58, 0.0 }
 0x775   :  { %1056 = vadd.xlane.f32.xlu1 %v1055_v60  ;;  %v665_v63 = vsel %vm652_vm5, %v3420_v59, 0.0 }
 0x776   :  { %666 = vadd.xlane.f32.xlu0 %v665_v63 }
 0x777   :  { %v3422_v2 = vpop.eup %3421 }
 0x778   :  { %v1058_v3 = vsel %vm652_vm5, %v3422_v2, 0.0 }
 0x77a   :  { %1059 = vadd.xlane.f32.xlu0 %v1058_v3  ;;  %v106_v3 = vld [vmem:[#allocation7 + $0x18] sm:$0xff] }
 0x786   :  { %3407 = vrot.lane.b32.xlu1 %v3406_v61, %s3657_s18 }
 0x7f9   :  { %v779_v8 = vpop.xlane.xlu0 %778 }
 0x7fa   :  { %v776_v7 = vpop.xlane.xlu1 %775 }
 0x7fb   :  { %3423 = vrcp.f32 %v776_v7 }
 0x7fc   :  { %3425 = vrcp.f32 %v779_v8 }
 0x7fe   :  { %v664_v9 = vpop.xlane.xlu1 %663 }
 0x7ff   :  { %3427 = vrcp.f32 %v664_v9 }
 0x802   :  { %v1057_v10 = vpop.xlane.xlu1 %1056 }
 0x803   :  { %v667_v12 = vpop.xlane.xlu0 %666 }
 0x804   :  { %3429 = vrcp.f32 %v667_v12  ;;  %v109_v12 = vld [vmem:[#allocation7 + $0x30] sm:$0xff] }
 0x805   :  { %v3424_v11 = vpop.eup %3423  ;;  %3431 = vrcp.f32 %v1057_v10  ;;  %v104_v10 = vld [vmem:[#allocation7 + $0x8] sm:$0xff] }
 0x806   :  { %v3408_v13 = vpop.permute.xlu1 %3407  ;;  %v782_v14 = vmul.f32 %v3424_v11, %v3414_v45  ;;  %v3426_v19 = vpop.eup %3425  ;;  %v100_v45 = vld [vmem:[#allocation6 + $0x28] sm:$0xff]  ;;  %v107_v11 = vld [vmem:[#allocation7 + $0x20] sm:$0xff] }
 0x807   :  { %v3410_v15 = vunpack.i.h.bf16 %v3408_v13  ;;  %v3409_v16 = vunpack.i.l.bf16 %v3408_v13  ;;  %v783_v55 = vmul.f32 %v3426_v19, %v3412_v44  ;;  %v1060_v23 = vpop.xlane.xlu0 %1059  ;;  %v98_v44 = vld [vmem:[#allocation6 + $0x18] sm:$0xff]  ;;  %v3287_v50 = vpack.c.bf16 %v102_v47, %v100_v45  ;;  %v112_v13 = vld [vmem:[#allocation7 + $0x48] sm:$0xff] }
 0x808   :  { %3036 = vmatprep.mubr.msk.f32.mxu0 %vm648_vm7, %v782_v14  ;;  %3433 = vrcp.f32 %v1060_v23  ;;  %v3283_v46 = vpack.c.bf16 %v98_v44, %v96_v43  ;;  %v3964_v14 = vpack.c.bf16 %v107_v11, %v104_v10 }
 0x809   :  { %v680_v61 = vsel %vm3823_vm15, %v3409_v16, 0.0  ;;  %v558_v17 = vsel %vm543_vm14, %v3409_v16, 0.0  ;;  %v3428_v20 = vpop.eup %3427  ;;  %v961_v22 = vsel %vm3872_vm4, %v3409_v16, 0.0  ;;  %v1159_v33 = vsel %vm3816_vm13, %v3409_v16, 0.0  ;;  %v110_v16 = vld [vmem:[#allocation7 + $0x38] sm:$0xff] }
 0x80a   :  { %v3247_v18 = vpack.c.bf16 %v680_v61, %v3410_v15  ;;  %v3253_v21 = vpack.c.bf16 %v558_v17, %v3410_v15  ;;  %v670_v24 = vmul.f32 %v3428_v20, %v3416_v51  ;;  %v3265_v49 = vpack.c.bf16 %v961_v22, %v3410_v15  ;;  %3284 = vmatprep.subr.bf16.mxu1 %v3283_v46  ;;  %v113_v61 = vld [vmem:[#allocation7 + $0x50] sm:$0xff] }
 0x80b   :  { %v3277_v34 = vpack.c.bf16 %v1159_v33, %v3410_v15  ;;  %3286 = vmatpush3.bf16.msra.mxu1 %v3283_v46  ;;  %v3295_v15 = vpack.c.bf16 %v112_v13, %v109_v12  ;;  %v3968_v17 = vpack.c.bf16 %v113_v61, %v110_v16  ;;  %vm1620_vm13 = vcmp.eq.s32.totalorder %v3783_v25, 0 }
 0x80c   :  { %3249 = vmatprep.subr.msk.bf16.mxu0 %vm3248_vm9, %v3247_v18  ;;  %3288 = vmatprep.subr.bf16.mxu1 %v3287_v50  ;;  %vm1738_vm14 = vcmp.eq.s32.totalorder %v3783_v25, 1  ;;  %vm1857_vm15 = vcmp.eq.s32.totalorder %v3783_v25, 2  ;;  %vm2333_vm4 = vcmp.eq.s32.totalorder %v3783_v25, 6 }
 0x80d   :  { %3252 = vmatpush3.bf16.msk.msra.mxu0 %vm3248_vm9, %v3247_v18  ;;  %v1351_v18 = vsub.s32 3, %v3783_v25 }
 0x80e   :  { %3255 = vmatprep.subr.msk.bf16.mxu0 %vm3254_vm10, %v3253_v21  ;;  %v3430_v28 = vpop.eup %3429 }
 0x80f   :  { %v3432_v29 = vpop.eup %3431  ;;  %v671_v30 = vmul.f32 %v3430_v28, %v3420_v59  ;;  %3290 = vmatpush3.bf16.msra.mxu1 %v3287_v50  ;;  %v1352_v19 = vrot.slane %v3788_v27, %v1351_v18 }
 0x810   :  { %3037 = vmatmul.mubr.msk.f32.vlgmr.msra.gmra.mrb[6].mxu0 %vm648_vm7, %v783_v55  ;;  %v1063_v31 = vmul.f32 %v3432_v29, %v3418_v58 }
 0x811   :  { %3258 = vmatpush3.bf16.msk.msra.mxu0 %vm3254_vm10, %v3253_v21  ;;  %3043 = vmatprep.mubr.msk.f32.mxu0 %vm648_vm7, %v670_v24 }
 0x812   :  { %3267 = vmatprep.subr.msk.bf16.mxu0 %vm3266_vm11, %v3265_v49  ;;  %v3434_v6 = vpop.eup %3433 }
 0x813   :  { %v1064_v32 = vmul.f32 %v3434_v6, %v3422_v2  ;;  %v103_v2 = vld [vmem:[#allocation7] sm:$0xff] }
 0x814   :  { %v3291_v7 = vpack.c.bf16 %v106_v3, %v103_v2 }
 0x816   :  { %3292 = vmatprep.subr.bf16.mxu1 %v3291_v7 }
 0x818   :  { %3044 = vmatmul.mubr.msk.f32.vlgmr.msra.gmra.mrb[6].mxu0 %vm648_vm7, %v671_v30 }
 0x819   :  { %3270 = vmatpush3.bf16.msk.msra.mxu0 %vm3266_vm11, %v3265_v49  ;;  %3057 = vmatprep.mubr.msk.f32.mxu0 %vm648_vm7, %v1063_v31  ;;  %v1436_v49 = vsub.s32 4, %v3783_v25 }
 0x81a   :  { %3273 = vmatprep.subr.msk.bf16.mxu0 %vm3849_vm1, %v3853_v5 }
 0x81b   :  { %v1437_v28 = vrot.slane %v3788_v27, %v1436_v49 }
 0x820   :  { %3058 = vmatmul.mubr.msk.f32.vlgmr.msra.gmra.mrb[6].mxu0 %vm648_vm7, %v1064_v32 }
 0x821   :  { %3064 = vmatprep.mubr.msk.f32.mxu0 %vm289_vm6, %v1156_v62 }
 0x822   :  { %3276 = vmatpush3.bf16.xpose.msk.msra.mxu0 %vm3849_vm1, %v3853_v5  ;;  %vm1976_vm1 = vcmp.eq.s32.totalorder %v3783_v25, 3 }
 0x823   :  { %3279 = vmatprep.subr.msk.bf16.mxu0 %vm3278_vm12, %v3277_v34 }
 0x829   :  { %3065 = vmatmul.mubr.msk.f32.vlgmr.msra.gmra.mrb[8].mxu0 %vm289_vm6, %v1157_v57 }
 0x82a   :  { %3282 = vmatpush3.bf16.msk.msra.mxu0 %vm3278_vm12, %v3277_v34 }
 0x82b   :  { %3299 = vmatprep.subr.bf16.mxu0 %v3653_v1 }
 0x8fc   :  { %v3066_v35 = vpop.f32.mrb[8].mxu0 }
 0x8fd   :  { %v1232_v37 = vpop.f32.mrb[9].mxu0  ;;  %v1244_v62 = vsel %vm652_vm5, %v3066_v35, -inf }
 0x8fe   :  { %v1241_v56 = vsel %vm648_vm7, %v1232_v37, -inf }
 0x8ff   :  { %1242 = vmax.xlane.f32.xlu0 %v1241_v56 }
 0x903   :  { %1245 = vmax.xlane.f32.xlu0 %v1244_v62 }
 0x98c   :  { %v1243_v4 = vpop.xlane.xlu0 %1242 }
 0x98d   :  { %v1247_v5 = vsub.f32 %v1232_v37, %v1243_v4 }
 0x98f   :  { %v1249_v38 = vmul.f32 1.442695, %v1247_v5 }
 0x990   :  { %v1246_v39 = vpop.xlane.xlu0 %1245 }
 0x991   :  { %3435 = vpow2.f32 %v1249_v38  ;;  %v1248_v52 = vsub.f32 %v3066_v35, %v1246_v39 }
 0x993   :  { %v1251_v53 = vmul.f32 1.442695, %v1248_v52 }
 0x995   :  { %3437 = vpow2.f32 %v1251_v53 }
 0x99b   :  { %v3436_v57 = vpop.eup %3435 }
 0x99c   :  { %v1253_v40 = vsel %vm648_vm7, %v3436_v57, 0.0 }
 0x99d   :  { %1254 = vadd.xlane.f32.xlu0 %v1253_v40 }
 0x99f   :  { %v3438_v41 = vpop.eup %3437 }
 0x9a0   :  { %v1256_v42 = vsel %vm652_vm5, %v3438_v41, 0.0 }
 0x9a1   :  { %1257 = vadd.xlane.f32.xlu0 %v1256_v42 }
 0xa2a   :  { %v1255_v51 = vpop.xlane.xlu0 %1254 }
 0xa2b   :  { %3439 = vrcp.f32 %v1255_v51 }
 0xa2e   :  { %v1258_v54 = vpop.xlane.xlu0 %1257 }
 0xa2f   :  { %3441 = vrcp.f32 %v1258_v54 }
 0xa35   :  { %v3440_v58 = vpop.eup %3439 }
 0xa36   :  { %v1261_v59 = vmul.f32 %v3440_v58, %v3436_v57 }
 0xa38   :  { %3071 = vmatprep.mubr.msk.f32.mxu0 %vm648_vm7, %v1261_v59 }
 0xa39   :  { %v3442_v60 = vpop.eup %3441 }
 0xa3a   :  { %v1262_v63 = vmul.f32 %v3442_v60, %v3438_v41 }
 0xa3c   :  { %3072 = vmatmul.mubr.msk.f32.vlgmr.msra.gmra.mrb[6].mxu0 %vm648_vm7, %v1262_v63 }
 0xa3d   :  { %3104 = vmatprep.mubr.msk.f32.mxu0 %vm3652_vm0, %v3651_v0  ;;  %3301 = vmatpush3.bf16.msra.mxu0 %v3964_v14 }
 0xa3e   :  { %3302 = vmatprep.subr.bf16.mxu0 %v3653_v1 }
 0xa41   :  { %3304 = vmatpush3.bf16.msra.mxu0 %v3968_v17 }
 0xa42   :  { %3311 = vmatprep.subr.bf16.mxu0 %v3653_v1 }
 0xa44   :  { %3105 = vmatmul.mubr.f32.vlgmr.msra.gmra.mrb[10].mxu0 %v3651_v0 }
 0xa45   :  { %3313 = vmatpush3.bf16.msra.mxu0 %v3964_v14  ;;  %3126 = vmatprep.mubr.msk.f32.mxu0 %vm3652_vm0, %v3651_v0 }
 0xa46   :  { %3314 = vmatprep.subr.bf16.mxu0 %v3653_v1 }
 0xa49   :  { %3316 = vmatpush3.bf16.msra.mxu0 %v3968_v17 }
 0xa4a   :  { %3323 = vmatprep.subr.bf16.mxu0 %v3653_v1 }
 0xb0f   :  { %v3073_v8 = vpop.f32.mrb[6].mxu0 }
 0xb10   :  { %v1338_v9 = vpop.f32.mrb[7].mxu0 }
 0xb11   :  { %3082 = vmatprep.mubr.msk.f32.mxu1 %vm289_vm6, %v1338_v9 }
 0xb12   :  { %3083 = vmatmul.mubr.msk.f32.vlgmr.msra.gmra.mrb[10].mxu1 %vm289_vm6, %v3073_v8 }
 0xb13   :  { %3294 = vmatpush3.bf16.msra.mxu1 %v3291_v7 }
 0xb14   :  { %3296 = vmatprep.subr.bf16.mxu1 %v3295_v15 }
 0xb17   :  { %3298 = vmatpush3.bf16.msra.mxu1 %v3295_v15  ;;  %v1591_v23 = vpop.f32.mrb[10].mxu0 }
 0xb18   :  { %3305 = vmatprep.subr.bf16.mxu1 %v3653_v1  ;;  %v3106_v24 = vpop.f32.mrb[11].mxu0 }
 0xbe5   :  { %v3084_v20 = vpop.f32.mrb[10].mxu1 }
 0xbe6   :  { %v1425_v21 = vpop.f32.mrb[11].mxu1  ;;  %v1431_v55 = vadd.f32 %v3084_v20, %v1352_v19 }
 0xbe7   :  { %v1426_v22 = vadd.f32 %v1425_v21, %v1352_v19 }
 0xbe9   :  { %3093 = vmatprep.mubr.msk.f32.mxu1 %vm289_vm6, %v1426_v22 }
 0xbea   :  { %3094 = vmatmul.mubr.msk.f32.vlgmr.msra.gmra.mrb[12].mxu1 %vm289_vm6, %v1431_v55 }
 0xbeb   :  { %3307 = vmatpush3.bf16.msra.mxu1 %v3964_v14  ;;  %3115 = vmatprep.mubr.msk.f32.mxu1 %vm3652_vm0, %v3651_v0 }
 0xbec   :  { %3308 = vmatprep.subr.bf16.mxu1 %v3653_v1 }
 0xbef   :  { %3310 = vmatpush3.bf16.msra.mxu1 %v3968_v17 }
 0xbf0   :  { %3317 = vmatprep.subr.bf16.mxu1 %v3653_v1 }
 0xcbd   :  { %v3095_v29 = vpop.f32.mrb[12].mxu1 }
 0xcbe   :  { %v3996_v30 = vadd.f32 %v3095_v29, %v1437_v28  ;;  %v1510_v31 = vpop.f32.mrb[13].mxu1 }
 0xcbf   :  { %v3998_v6 = vadd.f32 %v1510_v31, %v1437_v28 }
 0xcc1   :  { %v1595_v32 = vadd.f32 %v1591_v23, %v3998_v6 }
 0xcc3   :  { %3443 = vtanh.f32 %v1595_v32  ;;  %v2840_v34 = vmul.f32 -1.442695, %v1595_v32 }
 0xcc5   :  { %3445 = vpow2.f32 %v2840_v34 }
 0xccd   :  { %v3444_v33 = vpop.eup %3443 }
 0xcce   :  { %1605 = vrot.lane.b32.xlu1 %v3444_v33, %s3657_s18 }
 0xccf   :  { %v3446_v35 = vpop.eup %3445 }
 0xcd0   :  { %v1599_v37 = vadd.f32 1.0, %v3446_v35 }
 0xcd2   :  { %3447 = vrcp.f32 %v1599_v37 }
 0xcdc   :  { %v3448_v56 = vpop.eup %3447 }
 0xcdd   :  { %v1603_v4 = vmul.f32 0.0, %v3448_v56 }
 0xd40   :  { %v1606_v62 = vpop.permute.xlu1 %1605 }
 0xd41   :  { %v1608_v27 = vmul.f32 %v3448_v56, %v1606_v62 }
 0xd43   :  { %1610 = vrot.lane.b32.xlu0 %v1608_v27, %s3655_s0 }
 0xdb5   :  { %v1611_v5 = vpop.permute.xlu0 %1610 }
 0xdb6   :  { %v1613_v38 = vadd.f32 %v1611_v5, %v1603_v4 }
 0xdb8   :  { %3449 = vtanh.f32 %v1613_v38  ;;  %v1719_v58 = vrot.slane %v1613_v38, 7 }
 0xdc2   :  { %v3450_v39 = vpop.eup %3449 }
 0xdc3   :  { %1616 = vrot.lane.b32.xlu1 %v3450_v39, %s3657_s18 }
 0xe35   :  { %v1617_v52 = vpop.permute.xlu1 %1616 }
 0xe36   :  { %v1619_v53 = vmul.f32 %v3448_v56, %v1617_v52 }
 0xe38   :  { %1633 = vrot.lane.b32.xlu1 %v1619_v53, %s3655_s0  ;;  %v1629_v3 = vrot.slane %v1619_v53, %v3786_v26 }
 0xe3a   :  { %v1630_v11 = vsel %vm1620_vm13, %v1629_v3, 0.0 }
 0xeaa   :  { %v1634_v57 = vpop.permute.xlu1 %1633 }
 0xeab   :  { %3116 = vmatmul.mubr.msk.f32.vlgmr.msra.gmra.mrb[14].mxu1 %vm289_vm6, %v1634_v57 }
 0xeac   :  { %3319 = vmatpush3.bf16.msra.mxu1 %v3964_v14  ;;  %3137 = vmatprep.mubr.msk.f32.mxu1 %vm3652_vm0, %v3651_v0 }
 0xead   :  { %3320 = vmatprep.subr.bf16.mxu1 %v3653_v1 }
 0xeb0   :  { %3322 = vmatpush3.bf16.msra.mxu1 %v3968_v17 }
 0xeb1   :  { %3329 = vmatprep.subr.bf16.mxu1 %v3653_v1 }
 0xf7e   :  { %v1703_v40 = vpop.f32.mrb[14].mxu1 }
 0xf7f   :  { %v1708_v41 = vrot.slane %v1703_v40, 7  ;;  %v3117_v42 = vpop.f32.mrb[15].mxu1 }
 0xf81   :  { %v1710_v43 = vadd.f32 %v1708_v41, %v3998_v6 }
 0xf83   :  { %3451 = vtanh.f32 %v1710_v43  ;;  %v2842_v45 = vmul.f32 -1.442695, %v1710_v43 }
 0xf85   :  { %3453 = vpow2.f32 %v2842_v45 }
 0xf8d   :  { %v3452_v44 = vpop.eup %3451 }
 0xf8e   :  { %1723 = vrot.lane.b32.xlu1 %v3452_v44, %s3657_s18 }
 0xf8f   :  { %v3454_v46 = vpop.eup %3453 }
 0xf90   :  { %v1714_v47 = vadd.f32 1.0, %v3454_v46 }
 0xf92   :  { %3455 = vrcp.f32 %v1714_v47 }
 0xf9c   :  { %v3456_v50 = vpop.eup %3455 }
 0xf9d   :  { %v1721_v59 = vmul.f32 %v3456_v50, %v1719_v58 }
0x1000   :  { %v1724_v51 = vpop.permute.xlu1 %1723 }
0x1001   :  { %v1726_v54 = vmul.f32 %v3456_v50, %v1724_v51 }
0x1003   :  { %1728 = vrot.lane.b32.xlu1 %v1726_v54, %s3655_s0 }
0x1075   :  { %v1729_v60 = vpop.permute.xlu1 %1728 }
0x1076   :  { %v1731_v63 = vadd.f32 %v1729_v60, %v1721_v59 }
0x1078   :  { %3457 = vtanh.f32 %v1731_v63  ;;  %v1838_v29 = vrot.slane %v1731_v63, 7 }
0x1082   :  { %v3458_v2 = vpop.eup %3457 }
0x1083   :  { %1734 = vrot.lane.b32.xlu1 %v3458_v2, %s3657_s18 }
0x10f5   :  { %v1735_v7 = vpop.permute.xlu1 %1734 }
0x10f6   :  { %v1737_v8 = vmul.f32 %v3456_v50, %v1735_v7 }
0x10f8   :  { %v1747_v9 = vrot.slane %v1737_v8, %v3798_v36  ;;  %v1751_v10 = vrot.slane %v1737_v8, 1 }
0x10fa   :  { %v1748_v12 = vsel %vm1738_vm14, %v1747_v9, %v1630_v11  ;;  %1752 = vrot.lane.b32.xlu0 %v1751_v10, %s3655_s0 }
0x116c   :  { %v1753_v13 = vpop.permute.xlu0 %1752 }
0x116d   :  { %3127 = vmatmul.mubr.msk.f32.vlgmr.msra.gmra.mrb[12].mxu0 %vm289_vm6, %v1753_v13 }
0x116e   :  { %3325 = vmatpush3.bf16.msra.mxu0 %v3964_v14  ;;  %3148 = vmatprep.mubr.msk.f32.mxu0 %vm3652_vm0, %v3651_v0 }
0x116f   :  { %3326 = vmatprep.subr.bf16.mxu0 %v3653_v1 }
0x1172   :  { %3328 = vmatpush3.bf16.msra.mxu0 %v3968_v17 }
0x1173   :  { %3335 = vmatprep.subr.bf16.mxu0 %v3653_v1 }
0x1240   :  { %v1822_v15 = vpop.f32.mrb[12].mxu0 }
0x1241   :  { %v1827_v16 = vrot.slane %v1822_v15, 6  ;;  %v3128_v61 = vpop.f32.mrb[13].mxu0 }
0x1243   :  { %v1829_v19 = vadd.f32 %v1827_v16, %v3998_v6 }
0x1245   :  { %3459 = vtanh.f32 %v1829_v19  ;;  %v2844_v21 = vmul.f32 -1.442695, %v1829_v19 }
0x1247   :  { %3461 = vpow2.f32 %v2844_v21 }
0x124f   :  { %v3460_v20 = vpop.eup %3459 }
0x1250   :  { %1842 = vrot.lane.b32.xlu1 %v3460_v20, %s3657_s18 }
0x1251   :  { %v3462_v22 = vpop.eup %3461 }
0x1252   :  { %v1833_v55 = vadd.f32 1.0, %v3462_v22 }
0x1254   :  { %3463 = vrcp.f32 %v1833_v55 }
0x125e   :  { %v3464_v23 = vpop.eup %3463 }
0x125f   :  { %v1840_v31 = vmul.f32 %v3464_v23, %v1838_v29 }
0x12c2   :  { %v1843_v24 = vpop.permute.xlu1 %1842 }
0x12c3   :  { %v1845_v28 = vmul.f32 %v3464_v23, %v1843_v24 }
0x12c5   :  { %1847 = vrot.lane.b32.xlu0 %v1845_v28, %s3655_s0 }
0x1337   :  { %v1848_v32 = vpop.permute.xlu0 %1847 }
0x1338   :  { %v1850_v33 = vadd.f32 %v1848_v32, %v1840_v31 }
0x133a   :  { %3465 = vtanh.f32 %v1850_v33  ;;  %v1957_v44 = vrot.slane %v1850_v33, 7 }
0x1344   :  { %v3466_v34 = vpop.eup %3465 }
0x1345   :  { %1853 = vrot.lane.b32.xlu1 %v3466_v34, %s3657_s18 }
0x13b7   :  { %v1854_v35 = vpop.permute.xlu1 %1853 }
0x13b8   :  { %v1856_v37 = vmul.f32 %v3464_v23, %v1854_v35 }
0x13ba   :  { %v1866_v56 = vrot.slane %v1856_v37, %v454_v48  ;;  %v1870_v62 = vrot.slane %v1856_v37, 2 }
0x13bc   :  { %v1867_v27 = vsel %vm1857_vm15, %v1866_v56, %v1748_v12  ;;  %1871 = vrot.lane.b32.xlu0 %v1870_v62, %s3655_s0 }
0x142e   :  { %v1872_v4 = vpop.permute.xlu0 %1871 }
0x142f   :  { %3138 = vmatmul.mubr.msk.f32.vlgmr.msra.gmra.mrb[16].mxu1 %vm289_vm6, %v1872_v4 }
0x1430   :  { %3331 = vmatpush3.bf16.msra.mxu1 %v3964_v14  ;;  %3159 = vmatprep.mubr.msk.f32.mxu1 %vm3652_vm0, %v3651_v0 }
0x1431   :  { %3332 = vmatprep.subr.bf16.mxu1 %v3653_v1 }
0x1434   :  { %3334 = vmatpush3.bf16.msra.mxu1 %v3968_v17 }
0x1435   :  { %3341 = vmatprep.subr.bf16.mxu1 %v3653_v1 }
0x1502   :  { %v1941_v5 = vpop.f32.mrb[16].mxu1 }
0x1503   :  { %v1946_v48 = vrot.slane %v1941_v5, 5  ;;  %v3139_v38 = vpop.f32.mrb[17].mxu1 }
0x1505   :  { %v1948_v39 = vadd.f32 %v1946_v48, %v3998_v6 }
0x1507   :  { %3467 = vtanh.f32 %v1948_v39  ;;  %v2846_v53 = vmul.f32 -1.442695, %v1948_v39 }
0x1509   :  { %3469 = vpow2.f32 %v2846_v53  ;;  %v2222_v53 = vsub.s32 5, %v3783_v25 }
0x1511   :  { %v3468_v52 = vpop.eup %3467 }
0x1512   :  { %1961 = vrot.lane.b32.xlu1 %v3468_v52, %s3657_s18 }
0x1513   :  { %v3470_v57 = vpop.eup %3469 }
0x1514   :  { %v1952_v40 = vadd.f32 1.0, %v3470_v57 }
0x1516   :  { %3471 = vrcp.f32 %v1952_v40 }
0x1520   :  { %v3472_v41 = vpop.eup %3471 }
0x1521   :  { %v1959_v45 = vmul.f32 %v3472_v41, %v1957_v44 }
0x1584   :  { %v1962_v42 = vpop.permute.xlu1 %1961 }
0x1585   :  { %v1964_v43 = vmul.f32 %v3472_v41, %v1962_v42 }
0x1587   :  { %1966 = vrot.lane.b32.xlu0 %v1964_v43, %s3655_s0 }
0x15f9   :  { %v1967_v46 = vpop.permute.xlu0 %1966 }
0x15fa   :  { %v1969_v47 = vadd.f32 %v1967_v46, %v1959_v45 }
0x15fc   :  { %3473 = vtanh.f32 %v1969_v47  ;;  %v2076_v16 = vrot.slane %v1969_v47, 7 }
0x1606   :  { %v3474_v50 = vpop.eup %3473 }
0x1607   :  { %1972 = vrot.lane.b32.xlu1 %v3474_v50, %s3657_s18 }
0x1679   :  { %v1973_v51 = vpop.permute.xlu1 %1972 }
0x167a   :  { %v1975_v54 = vmul.f32 %v3472_v41, %v1973_v51 }
0x167c   :  { %v1985_v58 = vrot.slane %v1975_v54, %v1351_v18  ;;  %v1989_v59 = vrot.slane %v1975_v54, 3 }
0x167e   :  { %v1986_v60 = vsel %vm1976_vm1, %v1985_v58, %v1867_v27  ;;  %1990 = vrot.lane.b32.xlu0 %v1989_v59, %s3655_s0 }
0x16f0   :  { %v1991_v63 = vpop.permute.xlu0 %1990 }
0x16f1   :  { %3149 = vmatmul.mubr.msk.f32.vlgmr.msra.gmra.mrb[14].mxu0 %vm289_vm6, %v1991_v63 }
0x16f2   :  { %3337 = vmatpush3.bf16.msra.mxu0 %v3964_v14  ;;  %3170 = vmatprep.mubr.msk.f32.mxu0 %vm3652_vm0, %v3651_v0 }
0x16f3   :  { %3338 = vmatprep.subr.bf16.mxu0 %v3653_v1 }
0x16f6   :  { %3340 = vmatpush3.bf16.msra.mxu0 %v3968_v17 }
0x16f7   :  { %3347 = vmatprep.subr.bf16.mxu0 %v3653_v1 }
0x17c4   :  { %v2060_v2 = vpop.f32.mrb[14].mxu0 }
0x17c5   :  { %v2065_v18 = vrot.slane %v2060_v2, 4  ;;  %v3150_v3 = vpop.f32.mrb[15].mxu0 }
0x17c7   :  { %v2067_v7 = vadd.f32 %v2065_v18, %v3998_v6 }
0x17c9   :  { %3475 = vtanh.f32 %v2067_v7  ;;  %v2848_v9 = vmul.f32 -1.442695, %v2067_v7 }
0x17cb   :  { %3477 = vpow2.f32 %v2848_v9 }
0x17d3   :  { %v3476_v8 = vpop.eup %3475 }
0x17d4   :  { %2080 = vrot.lane.b32.xlu1 %v3476_v8, %s3657_s18 }
0x17d5   :  { %v3478_v10 = vpop.eup %3477 }
0x17d6   :  { %v2071_v11 = vadd.f32 1.0, %v3478_v10  ;;  %v2341_v10 = vsub.s32 6, %v3783_v25 }
0x17d8   :  { %3479 = vrcp.f32 %v2071_v11 }
0x17e2   :  { %v3480_v12 = vpop.eup %3479 }
0x17e3   :  { %v2078_v61 = vmul.f32 %v3480_v12, %v2076_v16 }
0x1846   :  { %v2081_v13 = vpop.permute.xlu1 %2080 }
0x1847   :  { %v2083_v15 = vmul.f32 %v3480_v12, %v2081_v13 }
0x1849   :  { %2085 = vrot.lane.b32.xlu0 %v2083_v15, %s3655_s0 }
0x18bb   :  { %v2086_v19 = vpop.permute.xlu0 %2085 }
0x18bc   :  { %v2088_v20 = vadd.f32 %v2086_v19, %v2078_v61 }
0x18be   :  { %3481 = vtanh.f32 %v2088_v20  ;;  %v2195_v5 = vrot.slane %v2088_v20, 7 }
0x18c8   :  { %v3482_v21 = vpop.eup %3481 }
0x18c9   :  { %2091 = vrot.lane.b32.xlu1 %v3482_v21, %s3657_s18 }
0x193b   :  { %v2092_v22 = vpop.permute.xlu1 %2091 }
0x193c   :  { %v2094_v55 = vmul.f32 %v3480_v12, %v2092_v22 }
0x193e   :  { %v2104_v23 = vrot.slane %v2094_v55, %v1436_v49  ;;  %v2108_v24 = vrot.slane %v2094_v55, 4 }
0x1940   :  { %v2105_v28 = vsel %vm2095_vm2, %v2104_v23, %v1986_v60  ;;  %2109 = vrot.lane.b32.xlu0 %v2108_v24, %s3655_s0 }
0x19b2   :  { %v2110_v29 = vpop.permute.xlu0 %2109 }
0x19b3   :  { %3160 = vmatmul.mubr.msk.f32.vlgmr.msra.gmra.mrb[18].mxu1 %vm289_vm6, %v2110_v29 }
0x19b4   :  { %3343 = vmatpush3.bf16.msra.mxu1 %v3964_v14  ;;  %3181 = vmatprep.mubr.msk.f32.mxu1 %vm3652_vm0, %v3651_v0 }
0x19b5   :  { %3344 = vmatprep.subr.bf16.mxu1 %v3653_v1 }
0x19b8   :  { %3346 = vmatpush3.bf16.msra.mxu1 %v3968_v17 }
0x19b9   :  { %3353 = vmatprep.subr.bf16.mxu1 %v3653_v1 }
0x1a86   :  { %v2179_v31 = vpop.f32.mrb[18].mxu1 }
0x1a87   :  { %v2184_v49 = vrot.slane %v2179_v31, 3  ;;  %v3161_v32 = vpop.f32.mrb[19].mxu1 }
0x1a88   :  { %v2460_v32 = vsub.s32 7, %v3783_v25 }
0x1a89   :  { %v2186_v33 = vadd.f32 %v2184_v49, %v3998_v6 }
0x1a8b   :  { %3483 = vtanh.f32 %v2186_v33  ;;  %v2850_v35 = vmul.f32 -1.442695, %v2186_v33 }
0x1a8d   :  { %3485 = vpow2.f32 %v2850_v35 }
0x1a95   :  { %v3484_v34 = vpop.eup %3483 }
0x1a96   :  { %2199 = vrot.lane.b32.xlu1 %v3484_v34, %s3657_s18 }
0x1a97   :  { %v3486_v37 = vpop.eup %3485 }
0x1a98   :  { %v2190_v56 = vadd.f32 1.0, %v3486_v37 }
0x1a9a   :  { %3487 = vrcp.f32 %v2190_v56 }
0x1aa4   :  { %v3488_v62 = vpop.eup %3487 }
0x1aa5   :  { %v2197_v48 = vmul.f32 %v3488_v62, %v2195_v5 }
0x1b08   :  { %v2200_v27 = vpop.permute.xlu1 %2199 }
0x1b09   :  { %v2202_v4 = vmul.f32 %v3488_v62, %v2200_v27 }
0x1b0b   :  { %2204 = vrot.lane.b32.xlu0 %v2202_v4, %s3655_s0 }
0x1b7d   :  { %v2205_v38 = vpop.permute.xlu0 %2204 }
0x1b7e   :  { %v2207_v39 = vadd.f32 %v2205_v38, %v2197_v48 }
0x1b80   :  { %3489 = vtanh.f32 %v2207_v39  ;;  %v2314_v18 = vrot.slane %v2207_v39, 7 }
0x1b8a   :  { %v3490_v52 = vpop.eup %3489 }
0x1b8b   :  { %2210 = vrot.lane.b32.xlu1 %v3490_v52, %s3657_s18 }
0x1bfd   :  { %v2211_v57 = vpop.permute.xlu1 %2210 }
0x1bfe   :  { %v2213_v40 = vmul.f32 %v3488_v62, %v2211_v57 }
0x1c00   :  { %v2223_v41 = vrot.slane %v2213_v40, %v2222_v53  ;;  %v2227_v42 = vrot.slane %v2213_v40, 5 }
0x1c02   :  { %2228 = vrot.lane.b32.xlu0 %v2227_v42, %s3655_s0  ;;  %v2224_v43 = vsel %vm2214_vm3, %v2223_v41, %v2105_v28 }
0x1c74   :  { %v2229_v44 = vpop.permute.xlu0 %2228 }
0x1c75   :  { %3171 = vmatmul.mubr.msk.f32.vlgmr.msra.gmra.mrb[16].mxu0 %vm289_vm6, %v2229_v44 }
0x1c76   :  { %3349 = vmatpush3.bf16.msra.mxu0 %v3964_v14  ;;  %3192 = vmatprep.mubr.msk.f32.mxu0 %vm3652_vm0, %v3651_v0 }
0x1c77   :  { %3350 = vmatprep.subr.bf16.mxu0 %v3653_v1 }
0x1c7a   :  { %3352 = vmatpush3.bf16.msra.mxu0 %v3968_v17 }
0x1d48   :  { %v2298_v45 = vpop.f32.mrb[16].mxu0 }
0x1d49   :  { %v2303_v46 = vrot.slane %v2298_v45, 2  ;;  %v3172_v47 = vpop.f32.mrb[17].mxu0 }
0x1d4b   :  { %v2305_v50 = vadd.f32 %v2303_v46, %v3998_v6 }
0x1d4d   :  { %3491 = vtanh.f32 %v2305_v50  ;;  %v2852_v54 = vmul.f32 -1.442695, %v2305_v50 }
0x1d4f   :  { %3493 = vpow2.f32 %v2852_v54 }
0x1d57   :  { %v3492_v51 = vpop.eup %3491 }
0x1d58   :  { %2318 = vrot.lane.b32.xlu1 %v3492_v51, %s3657_s18 }
0x1d59   :  { %v3494_v58 = vpop.eup %3493 }
0x1d5a   :  { %v2309_v59 = vadd.f32 1.0, %v3494_v58 }
0x1d5c   :  { %3495 = vrcp.f32 %v2309_v59 }
0x1d66   :  { %v3496_v60 = vpop.eup %3495 }
0x1d67   :  { %v2316_v3 = vmul.f32 %v3496_v60, %v2314_v18 }
0x1dca   :  { %v2319_v63 = vpop.permute.xlu1 %2318 }
0x1dcb   :  { %v2321_v2 = vmul.f32 %v3496_v60, %v2319_v63 }
0x1dcd   :  { %2323 = vrot.lane.b32.xlu0 %v2321_v2, %s3655_s0 }
0x1e3f   :  { %v2324_v7 = vpop.permute.xlu0 %2323 }
0x1e40   :  { %v2326_v8 = vadd.f32 %v2324_v7, %v2316_v3 }
0x1e42   :  { %3497 = vtanh.f32 %v2326_v8 }
0x1e4c   :  { %v3498_v9 = vpop.eup %3497 }
0x1e4d   :  { %2329 = vrot.lane.b32.xlu1 %v3498_v9, %s3657_s18 }
0x1ebf   :  { %v2330_v11 = vpop.permute.xlu1 %2329 }
0x1ec0   :  { %v2332_v12 = vmul.f32 %v3496_v60, %v2330_v11 }
0x1ec2   :  { %v2342_v13 = vrot.slane %v2332_v12, %v2341_v10  ;;  %v2346_v15 = vrot.slane %v2332_v12, 6 }
0x1ec4   :  { %2347 = vrot.lane.b32.xlu0 %v2346_v15, %s3655_s0  ;;  %v2343_v16 = vsel %vm2333_vm4, %v2342_v13, %v2224_v43  ;;  %v105_v15 = vld [vmem:[#allocation7 + $0x10] sm:$0xff] }
0x1f36   :  { %v2348_v61 = vpop.permute.xlu0 %2347 }
0x1f37   :  { %3182 = vmatmul.mubr.msk.f32.vlgmr.msra.gmra.mrb[20].mxu1 %vm289_vm6, %v2348_v61  ;;  %v111_v61 = vld [vmem:[#allocation7 + $0x40] sm:$0xff] }
0x1f38   :  { %3355 = vmatpush3.bf16.msra.mxu1 %v3964_v14  ;;  %3203 = vmatprep.mubr.msk.f32.mxu1 %vm3652_vm0, %v3651_v0  ;;  %vm2452_vm0 = vcmp.eq.s32.totalorder %v3783_v25, 7 }
0x1f39   :  { %3356 = vmatprep.subr.bf16.mxu1 %v3653_v1  ;;  %v2433_v1 = vrot.slane %v2326_v8, 7 }
0x1f3c   :  { %3358 = vmatpush3.bf16.msra.mxu1 %v3968_v17 }
0x200a   :  { %v2417_v19 = vpop.f32.mrb[20].mxu1 }
0x200b   :  { %v2422_v20 = vrot.slane %v2417_v19, 1  ;;  %v3183_v21 = vpop.f32.mrb[21].mxu1 }
0x200d   :  { %v2424_v22 = vadd.f32 %v2422_v20, %v3998_v6  ;;  %v114_v20 = vld [vmem:[#allocation7 + $0x58] sm:$0xff] }
0x200e   :  { %v3363_v21 = vpack.c.bf16 %v114_v20, %v111_v61 }
0x200f   :  { %3499 = vtanh.f32 %v2424_v22  ;;  %v2854_v23 = vmul.f32 -1.442695, %v2424_v22 }
0x2011   :  { %3501 = vpow2.f32 %v2854_v23 }
0x2019   :  { %v3500_v55 = vpop.eup %3499 }
0x201a   :  { %2437 = vrot.lane.b32.xlu1 %v3500_v55, %s3657_s18  ;;  %v1521_v55 = vadd.s32 8, %v3783_v25 }
0x201b   :  { %v3502_v24 = vpop.eup %3501 }
0x201c   :  { %v2428_v14 = vadd.f32 1.0, %v3502_v24  ;;  %vm2569_vm5 = vcmp.eq.s32.totalorder %v1521_v55, 8  ;;  %vm2687_vm7 = vcmp.eq.s32.totalorder %v1521_v55, 9 }
0x201e   :  { %3503 = vrcp.f32 %v2428_v14 }
0x2028   :  { %v3504_v28 = vpop.eup %3503 }
0x2029   :  { %v2435_v17 = vmul.f32 %v3504_v28, %v2433_v1 }
0x208c   :  { %v2438_v0 = vpop.permute.xlu1 %2437 }
0x208d   :  { %v2440_v29 = vmul.f32 %v3504_v28, %v2438_v0 }
0x208f   :  { %2442 = vrot.lane.b32.xlu0 %v2440_v29, %s3655_s0 }
0x2101   :  { %v2443_v31 = vpop.permute.xlu0 %2442 }
0x2102   :  { %v2445_v49 = vadd.f32 %v2443_v31, %v2435_v17  ;;  %v3523_v17 = vld [vmem:[#allocation9] sm:$0x3f] }
0x2103   :  { %v2701_v31 = vrot.slane %v3523_v17, %v2222_v53 }
0x2104   :  { %3505 = vtanh.f32 %v2445_v49  ;;  %v2549_v42 = vrot.slane %v2445_v49, 7 }
0x210e   :  { %v3506_v6 = vpop.eup %3505 }
0x210f   :  { %2448 = vrot.lane.b32.xlu1 %v3506_v6, %s3657_s18 }
0x2181   :  { %v2449_v33 = vpop.permute.xlu1 %2448 }
0x2182   :  { %v2451_v34 = vmul.f32 %v3504_v28, %v2449_v33 }
0x2184   :  { %v2461_v35 = vrot.slane %v2451_v34, %v2460_v32  ;;  %v2465_v37 = vrot.slane %v2451_v34, 7 }
0x2186   :  { %2466 = vrot.lane.b32.xlu0 %v2465_v37, %s3655_s0  ;;  %v2462_v56 = vsel %vm2452_vm0, %v2461_v35, %v2343_v16  ;;  %v108_v16 = vld [vmem:[#allocation7 + $0x28] sm:$0xff] }
0x2187   :  { %v3359_v19 = vpack.c.bf16 %v108_v16, %v105_v15 }
0x2189   :  { %3360 = vmatprep.subr.bf16.mxu0 %v3359_v19 }
0x21f8   :  { %v2467_v62 = vpop.permute.xlu0 %2466 }
0x21f9   :  { %3193 = vmatmul.mubr.msk.f32.vlgmr.msra.gmra.mrb[18].mxu0 %vm289_vm6, %v2467_v62 }
0x21fa   :  { %3362 = vmatpush3.bf16.msra.mxu0 %v3359_v19 }
0x21fb   :  { %3364 = vmatprep.subr.bf16.mxu0 %v3363_v21 }
0x21fe   :  { %3366 = vmatpush3.bf16.msra.mxu0 %v3363_v21 }
0x22cc   :  { %v2536_v27 = vpop.f32.mrb[18].mxu0 }
0x22cd   :  { %v2540_v4 = vadd.f32 %v2536_v27, %v3996_v30  ;;  %v3194_v5 = vpop.f32.mrb[19].mxu0 }
0x22cf   :  { %3507 = vtanh.f32 %v2540_v4  ;;  %v2856_v38 = vmul.f32 -1.442695, %v2540_v4 }
0x22d1   :  { %3509 = vpow2.f32 %v2856_v38 }
0x22d9   :  { %v3508_v48 = vpop.eup %3507 }
0x22da   :  { %2553 = vrot.lane.b32.xlu1 %v3508_v48, %s3657_s18 }
0x22db   :  { %v3510_v39 = vpop.eup %3509 }
0x22dc   :  { %v2544_v52 = vadd.f32 1.0, %v3510_v39 }
0x22de   :  { %3511 = vrcp.f32 %v2544_v52 }
0x22e8   :  { %v3512_v57 = vpop.eup %3511 }
0x22e9   :  { %v2551_v43 = vmul.f32 %v3512_v57, %v2549_v42 }
0x234c   :  { %v2554_v40 = vpop.permute.xlu1 %2553 }
0x234d   :  { %v2556_v41 = vmul.f32 %v3512_v57, %v2554_v40 }
0x234f   :  { %2558 = vrot.lane.b32.xlu0 %v2556_v41, %s3655_s0 }
0x23c1   :  { %v2559_v44 = vpop.permute.xlu0 %2558 }
0x23c2   :  { %v2561_v45 = vadd.f32 %v2559_v44, %v2551_v43 }
0x23c4   :  { %3513 = vtanh.f32 %v2561_v45  ;;  %v2667_v10 = vrot.slane %v2561_v45, 7 }
0x23ce   :  { %v3514_v46 = vpop.eup %3513 }
0x23cf   :  { %2564 = vrot.lane.b32.xlu1 %v3514_v46, %s3657_s18 }
0x2441   :  { %v2565_v47 = vpop.permute.xlu1 %2564 }
0x2442   :  { %v2567_v50 = vmul.f32 %v3512_v57, %v2565_v47 }
0x2444   :  { %2581 = vrot.lane.b32.xlu0 %v2567_v50, %s3655_s0  ;;  %v2577_v23 = vrot.slane %v2567_v50, %v3786_v26 }
0x2446   :  { %v2579_v0 = vsel %vm2569_vm5, %v2577_v23, 0.0 }
0x24b6   :  { %v2582_v51 = vpop.permute.xlu0 %2581 }
0x24b7   :  { %3204 = vmatmul.mubr.msk.f32.vlgmr.msra.gmra.mrb[22].mxu1 %vm289_vm6, %v2582_v51 }
0x258a   :  { %v2651_v54 = vpop.f32.mrb[22].mxu1 }
0x258b   :  { %v2656_v58 = vrot.slane %v2651_v54, 7  ;;  %v3205_v59 = vpop.f32.mrb[23].mxu1 }
0x258d   :  { %v2658_v60 = vadd.f32 %v2656_v58, %v3996_v30 }
0x258f   :  { %3515 = vtanh.f32 %v2658_v60  ;;  %v2858_v2 = vmul.f32 -1.442695, %v2658_v60 }
0x2591   :  { %3517 = vpow2.f32 %v2858_v2 }
0x2599   :  { %v3516_v63 = vpop.eup %3515 }
0x259a   :  { %2671 = vrot.lane.b32.xlu1 %v3516_v63, %s3657_s18 }
0x259b   :  { %v3518_v18 = vpop.eup %3517 }
0x259c   :  { %v2662_v3 = vadd.f32 1.0, %v3518_v18 }
0x259e   :  { %3519 = vrcp.f32 %v2662_v3 }
0x25a8   :  { %v3520_v7 = vpop.eup %3519 }
0x25a9   :  { %v2669_v11 = vmul.f32 %v3520_v7, %v2667_v10 }
0x260c   :  { %v2672_v8 = vpop.permute.xlu1 %2671 }
0x260d   :  { %v2674_v9 = vmul.f32 %v3520_v7, %v2672_v8 }
0x260f   :  { %2676 = vrot.lane.b32.xlu0 %v2674_v9, %s3655_s0 }
0x2613   :  { %2704 = vrot.lane.b32.xlu0 %v2462_v56, %s3655_s0 }
0x2681   :  { %v2677_v12 = vpop.permute.xlu0 %2676 }
0x2682   :  { %v2679_v30 = vadd.f32 %v2677_v12, %v2669_v11 }
0x2684   :  { %3521 = vtanh.f32 %v2679_v30 }
0x2685   :  { %v2705_v13 = vpop.permute.xlu0 %2704 }
0x2686   :  { %3214 = vmatprep.mubr.msk.f32.mxu0 %vm289_vm6, %v2705_v13 }
0x268e   :  { %v3522_v22 = vpop.eup %3521 }
0x268f   :  { %2682 = vrot.lane.b32.xlu1 %v3522_v22, %s3657_s18 }
0x2701   :  { %v2683_v24 = vpop.permute.xlu1 %2682 }
0x2702   :  { %v2685_v14 = vmul.f32 %v3520_v7, %v2683_v24 }
0x2704   :  { %v2695_v28 = vrot.slane %v2685_v14, %v3798_v36 }
0x2706   :  { %v2697_v29 = vsel %vm2687_vm7, %v2695_v28, %v2579_v0 }
0x2707   :  { %2706 = vrot.lane.b32.xlu1 %v2697_v29, %s3655_s0 }
0x2779   :  { %v2707_v1 = vpop.permute.xlu1 %2706 }
0x277a   :  { %3215 = vmatmul.mubr.msk.f32.vlgmr.msra.gmra.mrb[20].mxu0 %vm289_vm6, %v2707_v1 }
0x284d   :  { %v3216_v49 = vpop.f32.mrb[20].mxu0 }
0x284e   :  { %v2784_v6 = vadd.f32 %v3216_v49, %v2701_v31  ;;  %v2778_v26 = vpop.f32.mrb[21].mxu0 }
0x284f   :  { %v2779_v32 = vadd.f32 %v2778_v26, %v2701_v31 }
0x2850   :  { %2788 = vst [vmem:[%s4141_s7 + $0x8] sm:$0x3] %v2784_v6 }
0x2851   :  { %2787 = vst [vmem:[%s4141_s7] sm:$0xff] %v2779_v32 }
0x2852   :  { %2793 = vsyncpa [#allocation3], 1 }
0x2853   :  { %2794 = vsyncpa [#allocation5], 1 }
0x2854   :  { %2795 = vsyncpa [#allocation8], 1 }

</bundles_post_ra>
